<compile_context>
chip_gen: v5e
topology: v5e:2x2
jax: 0.10.0
libtpu: 0.0.40
codegen_flags: <defaults>
</compile_context>

<pallas_src>
import functools

import jax
import jax.numpy as jnp
from jax.experimental import pallas as pl
from jax.experimental.pallas import tpu as pltpu


def _round_up(x, m):
    return (x + m - 1) // m * m


# ----------------------------------------------------------------------------
# Pallas kernels
# ----------------------------------------------------------------------------
def _conv_mm_kernel(x_ref, w_ref, b_ref, *out_refs, act, tile_m, m_total,
                    with_stats):
    """One M-tile of (M,K)@(K,C) + bias + fused activation.

    x_ref: (tile_m, K_pad) bf16; w_ref: (K_pad, C_pad) bf16; b_ref: (1, C_pad) f32.
    out_refs[0]: (tile_m, C_pad) f32 output tile.
    If with_stats: out_refs[1:3] are (8, C_pad) per-tile partial sum / sum-of-
    squares blocks (rows of a (num_tiles*8, C_pad) array), masked to valid rows.
    """
    y_ref = out_refs[0]
    y = jnp.dot(x_ref[...], w_ref[...], preferred_element_type=jnp.float32)
    y = y + b_ref[...]                                   # (1, C_pad) broadcast
    if act == "leaky":
        y = jnp.where(y > 0, y, 0.2 * y)
    elif act == "sigmoid":
        y = pl.reciprocal(1.0 + jnp.exp(-y), approx=True)   # EUP exp + recip
    y_ref[...] = y

    if with_stats:
        s_ref, ss_ref = out_refs[1], out_refs[2]
        i = pl.program_id(0)
        rows = jax.lax.broadcasted_iota(jnp.int32, (tile_m, 1), 0) + i * tile_m
        valid = (rows < m_total).astype(jnp.float32)     # mask padded M rows
        ym = y * valid
        cp = y.shape[1]
        # Replicate the (1, C_pad) partial sums over 8 sublanes (aligned store);
        # the wrapper divides by 8 when reducing.
        s_ref[...] = jnp.broadcast_to(jnp.sum(ym, axis=0, keepdims=True), (8, cp))
        ss_ref[...] = jnp.broadcast_to(jnp.sum(ym * ym, axis=0, keepdims=True),
                                       (8, cp))


def _bn_apply_leaky_kernel(y_ref, scale_ref, shift_ref, o_ref):
    """y * scale + shift (precomputed per-channel BN affine), then LeakyReLU(0.2)."""
    o = y_ref[...] * scale_ref[...] + shift_ref[...]
    o_ref[...] = jnp.where(o > 0, o, 0.2 * o)


# ----------------------------------------------------------------------------
# pallas_call wrappers
# ----------------------------------------------------------------------------
def conv_matmul(patches_pad, w_pad, b_pad, *, act, with_stats, tile_m, m_total):
    mp, kp = patches_pad.shape
    _, cp = w_pad.shape
    nt = mp // tile_m

    out_shape = [jax.ShapeDtypeStruct((mp, cp), jnp.float32)]
    out_specs = [pl.BlockSpec((tile_m, cp), lambda i: (i, 0))]
    if with_stats:
        out_shape += [jax.ShapeDtypeStruct((nt * 8, cp), jnp.float32)] * 2
        out_specs += [pl.BlockSpec((8, cp), lambda i: (i, 0))] * 2

    return pl.pallas_call(
        functools.partial(_conv_mm_kernel, act=act, tile_m=tile_m,
                          m_total=m_total, with_stats=with_stats),
        out_shape=out_shape,
        grid=(nt,),
        in_specs=[
            pl.BlockSpec((tile_m, kp), lambda i: (i, 0)),
            pl.BlockSpec((kp, cp), lambda i: (0, 0)),
            pl.BlockSpec((1, cp), lambda i: (0, 0)),
        ],
        out_specs=out_specs,
        compiler_params=pltpu.CompilerParams(
            dimension_semantics=("parallel",)),
    )(patches_pad, w_pad, b_pad)


def bn_apply_leaky(y_pad, scale, shift, tile_m):
    mp, cp = y_pad.shape
    nt = mp // tile_m
    return pl.pallas_call(
        _bn_apply_leaky_kernel,
        out_shape=jax.ShapeDtypeStruct((mp, cp), jnp.float32),
        grid=(nt,),
        in_specs=[
            pl.BlockSpec((tile_m, cp), lambda i: (i, 0)),
            pl.BlockSpec((1, cp), lambda i: (0, 0)),
            pl.BlockSpec((1, cp), lambda i: (0, 0)),
        ],
        out_specs=pl.BlockSpec((tile_m, cp), lambda i: (i, 0)),
        compiler_params=pltpu.CompilerParams(
            dimension_semantics=("parallel",)),
    )(y_pad, scale.reshape(1, cp), shift.reshape(1, cp))


# ----------------------------------------------------------------------------
# Glue: im2col + per-layer driver
# ----------------------------------------------------------------------------
def _im2col(x_nhwc, ksize=5, stride=2, pad=2):
    # TODO(synk): fuse the patch extraction into the Pallas kernel (haloed
    # strided DMA) to avoid materializing the tap-amplified patch tensor in HBM.
    N, H, W, C = x_nhwc.shape
    Ho = (H + 2 * pad - ksize) // stride + 1
    Wo = (W + 2 * pad - ksize) // stride + 1
    xp = jnp.pad(x_nhwc, ((0, 0), (pad, pad), (pad, pad), (0, 0)))
    patches = []
    for dy in range(ksize):
        for dx in range(ksize):
            patches.append(
                xp[:, dy:dy + stride * Ho:stride, dx:dx + stride * Wo:stride, :])
    p = jnp.stack(patches, axis=3)                        # (N,Ho,Wo,k*k,C)
    return p.reshape(N * Ho * Wo, ksize * ksize * C), (N, Ho, Wo)


def conv_layer(x_nhwc, layer):
    """Conv2d(k=5,s=2,p=2) + bias (+ BatchNorm) + activation for one layer."""
    w, b = layer["w"], layer["b"]
    cout, cin, kh, kw = w.shape
    patches, (N, Ho, Wo) = _im2col(x_nhwc, kh, 2, 2)
    M, K = patches.shape

    kp = _round_up(K, 128)                 # lane-dense K loads
    cp = _round_up(cout, 128)              # lane-dense output stores (crop later)
    tile_m = 256 if M >= 256 else _round_up(M, 8)
    mp = _round_up(M, tile_m)

    patches_pad = jnp.pad(patches.astype(jnp.bfloat16),
                          ((0, mp - M), (0, kp - K)))
    # (Cout,Cin,kh,kw) -> (kh,kw,Cin,Cout) -> (kh*kw*Cin, Cout); matches im2col order
    w2d = jnp.transpose(w, (2, 3, 1, 0)).reshape(K, cout).astype(jnp.bfloat16)
    w_pad = jnp.pad(w2d, ((0, kp - K), (0, cp - cout)))
    b_pad = jnp.pad(b, (0, cp - cout)).reshape(1, cp)

    if layer["bn"]:
        y_pad, psum, psumsq = conv_matmul(
            patches_pad, w_pad, b_pad, act="none", with_stats=True,
            tile_m=tile_m, m_total=M)
        mean = jnp.sum(psum, axis=0) / (8.0 * M)          # /8: sublane-replicated
        ex2 = jnp.sum(psumsq, axis=0) / (8.0 * M)
        var = ex2 - mean * mean                           # biased, as PyTorch train()
        gamma = jnp.pad(layer["gamma"], (0, cp - cout))
        beta = jnp.pad(layer["beta"], (0, cp - cout))
        scale = gamma * jax.lax.rsqrt(var + 1e-5)
        shift = beta - mean * scale
        y_pad = bn_apply_leaky(y_pad, scale, shift, tile_m)
    else:
        (y_pad,) = conv_matmul(
            patches_pad, w_pad, b_pad, act=layer["act"], with_stats=False,
            tile_m=tile_m, m_total=M)

    return y_pad[:M, :cout].reshape(N, Ho, Wo, cout)


# ----------------------------------------------------------------------------
# Discriminator
# ----------------------------------------------------------------------------
class Discriminator:
    """Port of the PyTorch Discriminator (Ctype=1 -> Conv 5/2/2, bOut1=True).

    Layer i: Conv2d(of, nf, 5, 2, 2); BatchNorm2d for 0 < i < nDep-1;
    LeakyReLU(0.2) for i < nDep-1 else Sigmoid.  forward crops [:, :, 1:-1, 1:-1].
    """

    def __init__(self, ndf, nDep, nc=3, key=None):
        if key is None:
            key = jax.random.PRNGKey(0)
        self.layers = []
        of = nc
        for i in range(nDep):
            nf = 1 if i == nDep - 1 else ndf * (2 ** i)
            key, kw_, kb_ = jax.random.split(key, 3)
            fan_in = of * 5 * 5
            bound = 1.0 / (fan_in ** 0.5)
            w = jax.random.uniform(kw_, (nf, of, 5, 5), jnp.float32, -bound, bound)
            b = jax.random.uniform(kb_, (nf,), jnp.float32, -bound, bound)
            use_bn = (i != 0 and i != nDep - 1)
            act = "leaky" if i < nDep - 1 else "sigmoid"
            self.layers.append(dict(
                w=w, b=b, bn=use_bn, act=act,
                gamma=jnp.ones((nf,), jnp.float32) if use_bn else None,
                beta=jnp.zeros((nf,), jnp.float32) if use_bn else None,
            ))
            of = nf
        # TODO(synk): BatchNorm running-stat (momentum) buffer updates are a
        # training side effect and are not reproduced here.
        self._forward = jax.jit(self._forward_impl)

    def _forward_impl(self, x_nchw):
        x = jnp.transpose(x_nchw, (0, 2, 3, 1))        # NCHW -> NHWC
        for layer in self.layers:
            x = conv_layer(x, layer)
        out = x[:, 1:-1, 1:-1, :]                      # crop [:, :, 1:-1, 1:-1]
        return jnp.transpose(out, (0, 3, 1, 2))        # NHWC -> NCHW

    def __call__(self, x_nchw):
        return self._forward(x_nchw)


# ----------------------------------------------------------------------------
if __name__ == "__main__":
    key = jax.random.PRNGKey(0)
    k_params, k_x = jax.random.split(key)

    ndf, nDep, nc = 8, 3, 3
    N, H, W = 2, 32, 32                                # 32 -> 16 -> 8 -> 4 -> crop 2

    model = Discriminator(ndf, nDep, nc=nc, key=k_params)
    x = jax.random.normal(k_x, (N, nc, H, W), dtype=jnp.float32)

    out = jax.block_until_ready(model(x))

    assert out.shape == (N, 1, 2, 2), out.shape
    assert bool(jnp.all(jnp.isfinite(out)))
    # Sigmoid output (approx-reciprocal epilogue -> tiny tolerance on the bounds).
    assert bool(jnp.all((out > -1e-3) & (out < 1.0 + 1e-3)))
    print("KERNEL_OK")
</pallas_src>

<mosaic_0001>
module attributes {stable_mosaic.version = 11 : i64} {
  func.func @_conv_mm_kernel(%arg0: i32, %arg1: memref<256x128xbf16, #tpu.memory_space<vmem>>, %arg2: memref<128x128xbf16, #tpu.memory_space<vmem>>, %arg3: memref<1x128xf32, #tpu.memory_space<vmem>>, %arg4: memref<256x128xf32, #tpu.memory_space<vmem>>) attributes {dimension_semantics = [#tpu.dimension_semantics<parallel>], iteration_bounds = array<i64: 2>, scalar_prefetch = 0 : i64, scratch_operands = 0 : i64, tpu.core_type = #tpu.core_type<tc>, window_params = [{transform_indices = @transform_0, window_bounds = array<i64: 256, 128>}, {pipeline_mode = #tpu.pipeline_mode<synchronous>, transform_indices = @transform_1, window_bounds = array<i64: 128, 128>}, {pipeline_mode = #tpu.pipeline_mode<synchronous>, transform_indices = @transform_2, window_bounds = array<i64: 1, 128>}, {transform_indices = @transform_3, window_bounds = array<i64: 256, 128>}]} {
    %c0 = arith.constant 0 : index
    %c0_0 = arith.constant 0 : index
    %0 = vector.load %arg1[%c0, %c0_0] : memref<256x128xbf16, #tpu.memory_space<vmem>>, vector<256x128xbf16>
    %c0_1 = arith.constant 0 : index
    %c0_2 = arith.constant 0 : index
    %1 = vector.load %arg2[%c0_1, %c0_2] : memref<128x128xbf16, #tpu.memory_space<vmem>>, vector<128x128xbf16>
    %cst = arith.constant dense<0.000000e+00> : vector<256x128xf32>
    %2 = tpu.matmul %0, %1, %cst {dimension_numbers = #tpu.dot_dimension_numbers<[1], [0], [0], [1], [0, 0, 1, 1], [], []>} : vector<256x128xbf16>, vector<128x128xbf16>, vector<256x128xf32> -> vector<256x128xf32>
    %c0_3 = arith.constant 0 : index
    %c0_4 = arith.constant 0 : index
    %3 = vector.load %arg3[%c0_3, %c0_4] : memref<1x128xf32, #tpu.memory_space<vmem>>, vector<1x128xf32>
    %4 = vector.broadcast %3 : vector<1x128xf32> to vector<256x128xf32>
    %5 = arith.addf %2, %4 : vector<256x128xf32>
    %cst_5 = arith.constant 0.000000e+00 : f32
    %6 = vector.broadcast %cst_5 : f32 to vector<256x128xf32>
    %7 = arith.cmpf ogt, %5, %6 : vector<256x128xf32>
    %cst_6 = arith.constant 2.000000e-01 : f32
    %8 = vector.broadcast %cst_6 : f32 to vector<256x128xf32>
    %9 = arith.mulf %8, %5 : vector<256x128xf32>
    %10 = arith.select %7, %5, %9 : vector<256x128xi1>, vector<256x128xf32>
    %c0_7 = arith.constant 0 : index
    %c0_8 = arith.constant 0 : index
    %11 = vector.load %arg4[%c0_7, %c0_8] : memref<256x128xf32, #tpu.memory_space<vmem>>, vector<256x128xf32>
    tpu.vector_store %arg4[%c0_7, %c0_8], %10 {strides = array<i32>} : memref<256x128xf32, #tpu.memory_space<vmem>>, vector<256x128xf32>,
    return
  }
  func.func @transform_0(%arg0: i32) -> (i32, i32) {
    %c0_i32 = arith.constant 0 : i32
    %c0_i32_0 = arith.constant 0 : i32
    return %arg0, %c0_i32 : i32, i32
  }
  func.func @transform_1(%arg0: i32) -> (i32, i32) {
    %c0_i32 = arith.constant 0 : i32
    %c0_i32_0 = arith.constant 0 : i32
    %c0_i32_1 = arith.constant 0 : i32
    return %c0_i32, %c0_i32_0 : i32, i32
  }
  func.func @transform_2(%arg0: i32) -> (i32, i32) {
    %c0_i32 = arith.constant 0 : i32
    %c0_i32_0 = arith.constant 0 : i32
    %c0_i32_1 = arith.constant 0 : i32
    return %c0_i32, %c0_i32_0 : i32, i32
  }
  func.func @transform_3(%arg0: i32) -> (i32, i32) {
    %c0_i32 = arith.constant 0 : i32
    %c0_i32_0 = arith.constant 0 : i32
    return %arg0, %c0_i32 : i32, i32
  }
}

module attributes {stable_mosaic.version = 11 : i64} {
  func.func @_conv_mm_kernel(%arg0: i32, %arg1: memref<128x256xbf16, #tpu.memory_space<vmem>>, %arg2: memref<256x128xbf16, #tpu.memory_space<vmem>>, %arg3: memref<1x128xf32, #tpu.memory_space<vmem>>, %arg4: memref<128x128xf32, #tpu.memory_space<vmem>>, %arg5: memref<8x128xf32, #tpu.memory_space<vmem>>, %arg6: memref<8x128xf32, #tpu.memory_space<vmem>>) attributes {dimension_semantics = [#tpu.dimension_semantics<parallel>], iteration_bounds = array<i64: 1>, scalar_prefetch = 0 : i64, scratch_operands = 0 : i64, tpu.core_type = #tpu.core_type<tc>, window_params = [{transform_indices = @transform_0, window_bounds = array<i64: 128, 256>}, {pipeline_mode = #tpu.pipeline_mode<synchronous>, transform_indices = @transform_1, window_bounds = array<i64: 256, 128>}, {pipeline_mode = #tpu.pipeline_mode<synchronous>, transform_indices = @transform_2, window_bounds = array<i64: 1, 128>}, {transform_indices = @transform_3, window_bounds = array<i64: 128, 128>}, {transform_indices = @transform_4, window_bounds = array<i64: 8, 128>}, {transform_indices = @transform_5, window_bounds = array<i64: 8, 128>}]} {
    %c0 = arith.constant 0 : index
    %c0_0 = arith.constant 0 : index
    %0 = vector.load %arg1[%c0, %c0_0] : memref<128x256xbf16, #tpu.memory_space<vmem>>, vector<128x256xbf16>
    %c0_1 = arith.constant 0 : index
    %c0_2 = arith.constant 0 : index
    %1 = vector.load %arg2[%c0_1, %c0_2] : memref<256x128xbf16, #tpu.memory_space<vmem>>, vector<256x128xbf16>
    %cst = arith.constant dense<0.000000e+00> : vector<128x128xf32>
    %2 = tpu.matmul %0, %1, %cst {dimension_numbers = #tpu.dot_dimension_numbers<[1], [0], [0], [1], [0, 0, 1, 1], [], []>} : vector<128x256xbf16>, vector<256x128xbf16>, vector<128x128xf32> -> vector<128x128xf32>
    %c0_3 = arith.constant 0 : index
    %c0_4 = arith.constant 0 : index
    %3 = vector.load %arg3[%c0_3, %c0_4] : memref<1x128xf32, #tpu.memory_space<vmem>>, vector<1x128xf32>
    %4 = vector.broadcast %3 : vector<1x128xf32> to vector<128x128xf32>
    %5 = arith.addf %2, %4 : vector<128x128xf32>
    %c0_5 = arith.constant 0 : index
    %c0_6 = arith.constant 0 : index
    %6 = vector.load %arg4[%c0_5, %c0_6] : memref<128x128xf32, #tpu.memory_space<vmem>>, vector<128x128xf32>
    tpu.vector_store %arg4[%c0_5, %c0_6], %5 {strides = array<i32>} : memref<128x128xf32, #tpu.memory_space<vmem>>, vector<128x128xf32>,
    %7 = tpu.iota {dimensions = array<i32: 0>} : vector<128x1xi32>
    %c128_i32 = arith.constant 128 : i32
    %8 = arith.muli %arg0, %c128_i32 : i32
    %9 = vector.broadcast %8 : i32 to vector<128x1xi32>
    %10 = arith.addi %7, %9 : vector<128x1xi32>
    %c128_i32_7 = arith.constant 128 : i32
    %11 = vector.broadcast %c128_i32_7 : i32 to vector<128x1xi32>
    %12 = arith.cmpi slt, %10, %11 : vector<128x1xi32>
    %13 = arith.extui %12 : vector<128x1xi1> to vector<128x1xi32>
    %14 = arith.sitofp %13 : vector<128x1xi32> to vector<128x1xf32>
    %15 = vector.broadcast %14 : vector<128x1xf32> to vector<128x128xf32>
    %16 = arith.mulf %5, %15 : vector<128x128xf32>
    %cst_8 = arith.constant dense<0.000000e+00> : vector<128xf32>
    %17 = vector.multi_reduction <add>, %16, %cst_8 [0] : vector<128x128xf32> to vector<128xf32>
    %18 = vector.shape_cast %17 : vector<128xf32> to vector<1x128xf32>
    %19 = vector.shape_cast %18 : vector<1x128xf32> to vector<1x128xf32>
    %20 = vector.broadcast %19 : vector<1x128xf32> to vector<8x128xf32>
    %c0_9 = arith.constant 0 : index
    %c0_10 = arith.constant 0 : index
    %21 = vector.load %arg5[%c0_9, %c0_10] : memref<8x128xf32, #tpu.memory_space<vmem>>, vector<8x128xf32>
    tpu.vector_store %arg5[%c0_9, %c0_10], %20 {strides = array<i32>} : memref<8x128xf32, #tpu.memory_space<vmem>>, vector<8x128xf32>,
    %22 = arith.mulf %16, %16 : vector<128x128xf32>
    %cst_11 = arith.constant dense<0.000000e+00> : vector<128xf32>
    %23 = vector.multi_reduction <add>, %22, %cst_11 [0] : vector<128x128xf32> to vector<128xf32>
    %24 = vector.shape_cast %23 : vector<128xf32> to vector<1x128xf32>
    %25 = vector.shape_cast %24 : vector<1x128xf32> to vector<1x128xf32>
    %26 = vector.broadcast %25 : vector<1x128xf32> to vector<8x128xf32>
    %c0_12 = arith.constant 0 : index
    %c0_13 = arith.constant 0 : index
    %27 = vector.load %arg6[%c0_12, %c0_13] : memref<8x128xf32, #tpu.memory_space<vmem>>, vector<8x128xf32>
    tpu.vector_store %arg6[%c0_12, %c0_13], %26 {strides = array<i32>} : memref<8x128xf32, #tpu.memory_space<vmem>>, vector<8x128xf32>,
    return
  }
  func.func @transform_0(%arg0: i32) -> (i32, i32) {
    %c0_i32 = arith.constant 0 : i32
    %c0_i32_0 = arith.constant 0 : i32
    return %arg0, %c0_i32 : i32, i32
  }
  func.func @transform_1(%arg0: i32) -> (i32, i32) {
    %c0_i32 = arith.constant 0 : i32
    %c0_i32_0 = arith.constant 0 : i32
    %c0_i32_1 = arith.constant 0 : i32
    return %c0_i32, %c0_i32_0 : i32, i32
  }
  func.func @transform_2(%arg0: i32) -> (i32, i32) {
    %c0_i32 = arith.constant 0 : i32
    %c0_i32_0 = arith.constant 0 : i32
    %c0_i32_1 = arith.constant 0 : i32
    return %c0_i32, %c0_i32_0 : i32, i32
  }
  func.func @transform_3(%arg0: i32) -> (i32, i32) {
    %c0_i32 = arith.constant 0 : i32
    %c0_i32_0 = arith.constant 0 : i32
    return %arg0, %c0_i32 : i32, i32
  }
  func.func @transform_4(%arg0: i32) -> (i32, i32) {
    %c0_i32 = arith.constant 0 : i32
    %c0_i32_0 = arith.constant 0 : i32
    return %arg0, %c0_i32 : i32, i32
  }
  func.func @transform_5(%arg0: i32) -> (i32, i32) {
    %c0_i32 = arith.constant 0 : i32
    %c0_i32_0 = arith.constant 0 : i32
    return %arg0, %c0_i32 : i32, i32
  }
}

module attributes {stable_mosaic.version = 11 : i64} {
  func.func @_bn_apply_leaky_kernel(%arg0: i32, %arg1: memref<128x128xf32, #tpu.memory_space<vmem>>, %arg2: memref<1x128xf32, #tpu.memory_space<vmem>>, %arg3: memref<1x128xf32, #tpu.memory_space<vmem>>, %arg4: memref<128x128xf32, #tpu.memory_space<vmem>>) attributes {dimension_semantics = [#tpu.dimension_semantics<parallel>], iteration_bounds = array<i64: 1>, scalar_prefetch = 0 : i64, scratch_operands = 0 : i64, tpu.core_type = #tpu.core_type<tc>, window_params = [{transform_indices = @transform_0, window_bounds = array<i64: 128, 128>}, {pipeline_mode = #tpu.pipeline_mode<synchronous>, transform_indices = @transform_1, window_bounds = array<i64: 1, 128>}, {pipeline_mode = #tpu.pipeline_mode<synchronous>, transform_indices = @transform_2, window_bounds = array<i64: 1, 128>}, {transform_indices = @transform_3, window_bounds = array<i64: 128, 128>}]} {
    %c0 = arith.constant 0 : index
    %c0_0 = arith.constant 0 : index
    %0 = vector.load %arg1[%c0, %c0_0] : memref<128x128xf32, #tpu.memory_space<vmem>>, vector<128x128xf32>
    %c0_1 = arith.constant 0 : index
    %c0_2 = arith.constant 0 : index
    %1 = vector.load %arg2[%c0_1, %c0_2] : memref<1x128xf32, #tpu.memory_space<vmem>>, vector<1x128xf32>
    %2 = vector.broadcast %1 : vector<1x128xf32> to vector<128x128xf32>
    %3 = arith.mulf %0, %2 : vector<128x128xf32>
    %c0_3 = arith.constant 0 : index
    %c0_4 = arith.constant 0 : index
    %4 = vector.load %arg3[%c0_3, %c0_4] : memref<1x128xf32, #tpu.memory_space<vmem>>, vector<1x128xf32>
    %5 = vector.broadcast %4 : vector<1x128xf32> to vector<128x128xf32>
    %6 = arith.addf %3, %5 : vector<128x128xf32>
    %cst = arith.constant 0.000000e+00 : f32
    %7 = vector.broadcast %cst : f32 to vector<128x128xf32>
    %8 = arith.cmpf ogt, %6, %7 : vector<128x128xf32>
    %cst_5 = arith.constant 2.000000e-01 : f32
    %9 = vector.broadcast %cst_5 : f32 to vector<128x128xf32>
    %10 = arith.mulf %9, %6 : vector<128x128xf32>
    %11 = arith.select %8, %6, %10 : vector<128x128xi1>, vector<128x128xf32>
    %c0_6 = arith.constant 0 : index
    %c0_7 = arith.constant 0 : index
    %12 = vector.load %arg4[%c0_6, %c0_7] : memref<128x128xf32, #tpu.memory_space<vmem>>, vector<128x128xf32>
    tpu.vector_store %arg4[%c0_6, %c0_7], %11 {strides = array<i32>} : memref<128x128xf32, #tpu.memory_space<vmem>>, vector<128x128xf32>,
    return
  }
  func.func @transform_0(%arg0: i32) -> (i32, i32) {
    %c0_i32 = arith.constant 0 : i32
    %c0_i32_0 = arith.constant 0 : i32
    return %arg0, %c0_i32 : i32, i32
  }
  func.func @transform_1(%arg0: i32) -> (i32, i32) {
    %c0_i32 = arith.constant 0 : i32
    %c0_i32_0 = arith.constant 0 : i32
    %c0_i32_1 = arith.constant 0 : i32
    return %c0_i32, %c0_i32_0 : i32, i32
  }
  func.func @transform_2(%arg0: i32) -> (i32, i32) {
    %c0_i32 = arith.constant 0 : i32
    %c0_i32_0 = arith.constant 0 : i32
    %c0_i32_1 = arith.constant 0 : i32
    return %c0_i32, %c0_i32_0 : i32, i32
  }
  func.func @transform_3(%arg0: i32) -> (i32, i32) {
    %c0_i32 = arith.constant 0 : i32
    %c0_i32_0 = arith.constant 0 : i32
    return %arg0, %c0_i32 : i32, i32
  }
}

module attributes {stable_mosaic.version = 11 : i64} {
  func.func @_conv_mm_kernel(%arg0: i32, %arg1: memref<32x512xbf16, #tpu.memory_space<vmem>>, %arg2: memref<512x128xbf16, #tpu.memory_space<vmem>>, %arg3: memref<1x128xf32, #tpu.memory_space<vmem>>, %arg4: memref<32x128xf32, #tpu.memory_space<vmem>>) attributes {dimension_semantics = [#tpu.dimension_semantics<parallel>], iteration_bounds = array<i64: 1>, scalar_prefetch = 0 : i64, scratch_operands = 0 : i64, tpu.core_type = #tpu.core_type<tc>, window_params = [{transform_indices = @transform_0, window_bounds = array<i64: 32, 512>}, {pipeline_mode = #tpu.pipeline_mode<synchronous>, transform_indices = @transform_1, window_bounds = array<i64: 512, 128>}, {pipeline_mode = #tpu.pipeline_mode<synchronous>, transform_indices = @transform_2, window_bounds = array<i64: 1, 128>}, {transform_indices = @transform_3, window_bounds = array<i64: 32, 128>}]} {
    %c0 = arith.constant 0 : index
    %c0_0 = arith.constant 0 : index
    %0 = vector.load %arg1[%c0, %c0_0] : memref<32x512xbf16, #tpu.memory_space<vmem>>, vector<32x512xbf16>
    %c0_1 = arith.constant 0 : index
    %c0_2 = arith.constant 0 : index
    %1 = vector.load %arg2[%c0_1, %c0_2] : memref<512x128xbf16, #tpu.memory_space<vmem>>, vector<512x128xbf16>
    %cst = arith.constant dense<0.000000e+00> : vector<32x128xf32>
    %2 = tpu.matmul %0, %1, %cst {dimension_numbers = #tpu.dot_dimension_numbers<[1], [0], [0], [1], [0, 0, 1, 1], [], []>} : vector<32x512xbf16>, vector<512x128xbf16>, vector<32x128xf32> -> vector<32x128xf32>
    %c0_3 = arith.constant 0 : index
    %c0_4 = arith.constant 0 : index
    %3 = vector.load %arg3[%c0_3, %c0_4] : memref<1x128xf32, #tpu.memory_space<vmem>>, vector<1x128xf32>
    %4 = vector.broadcast %3 : vector<1x128xf32> to vector<32x128xf32>
    %5 = arith.addf %2, %4 : vector<32x128xf32>
    %cst_5 = arith.constant 0.000000e+00 : f32
    %6 = vector.broadcast %cst_5 : f32 to vector<32x128xf32>
    %7 = arith.subf %6, %5 : vector<32x128xf32>
    %8 = math.exp %7 : vector<32x128xf32>
    %cst_6 = arith.constant 1.000000e+00 : f32
    %9 = vector.broadcast %cst_6 : f32 to vector<32x128xf32>
    %10 = arith.addf %9, %8 : vector<32x128xf32>
    %11 = tpu.reciprocal %10 {approx = true} : vector<32x128xf32> -> vector<32x128xf32>
    %c0_7 = arith.constant 0 : index
    %c0_8 = arith.constant 0 : index
    %12 = vector.load %arg4[%c0_7, %c0_8] : memref<32x128xf32, #tpu.memory_space<vmem>>, vector<32x128xf32>
    tpu.vector_store %arg4[%c0_7, %c0_8], %11 {strides = array<i32>} : memref<32x128xf32, #tpu.memory_space<vmem>>, vector<32x128xf32>,
    return
  }
  func.func @transform_0(%arg0: i32) -> (i32, i32) {
    %c0_i32 = arith.constant 0 : i32
    %c0_i32_0 = arith.constant 0 : i32
    return %arg0, %c0_i32 : i32, i32
  }
  func.func @transform_1(%arg0: i32) -> (i32, i32) {
    %c0_i32 = arith.constant 0 : i32
    %c0_i32_0 = arith.constant 0 : i32
    %c0_i32_1 = arith.constant 0 : i32
    return %c0_i32, %c0_i32_0 : i32, i32
  }
  func.func @transform_2(%arg0: i32) -> (i32, i32) {
    %c0_i32 = arith.constant 0 : i32
    %c0_i32_0 = arith.constant 0 : i32
    %c0_i32_1 = arith.constant 0 : i32
    return %c0_i32, %c0_i32_0 : i32, i32
  }
  func.func @transform_3(%arg0: i32) -> (i32, i32) {
    %c0_i32 = arith.constant 0 : i32
    %c0_i32_0 = arith.constant 0 : i32
    return %arg0, %c0_i32 : i32, i32
  }
}

</mosaic_0001>

<bundles_post_ra>
// kernel: _forward_impl.4
= control target key start
LH: loop header
LB: loop body
LE: loop exit
PB: predicated region body
PF: predicated region fallthrough
CT: control target
= control target key end

     0   :  { %s835_s12 = smov 0   ;;  %s969_s0 = inlined_call_operand.vmem [shape: bf16[512,128], index: 0, kind: input, shape index: {}]   ;;  %s970_s1 = inlined_call_operand.vmem [shape: bf16[128,128], index: 1, kind: input, shape index: {}]   ;;  %s971_s2 = inlined_call_operand.vmem [shape: f32[1,128], index: 2, kind: input, shape index: {}]   ;;  %s972_s3 = inlined_call_operand.vmem [shape: f32[512,128], index: 3, kind: output, shape index: {}]  }
   0x1 LB: > { %s643_s13 = sadd.s32 4294967295, %s813_s12   ;;  %p647_p0 = scmp.ge.s32.totalorder %s813_s12, 1  ;;  %s813_s12 = sphi %s835_s12, %s13_s12  }
   0x2   : > { %p138_p1 = scmp.lt.s32.totalorder %s813_s12, 3 }
   0x4   : > { %p139_p2 = pnand %p647_p0, %p138_p1 }
   0x5   : > { %s648_s22 = sshll.u32 (!%p139_p2), %s643_s13, 5 }
   0x6   : > { %142 = sbr.rel (%p139_p2) target bundleno = 239 (0xef), region = 32  ;;  %p163_p3 = scmp.lt.s32.totalorder (!%p139_p2), %s648_s22, 63 }
   0xb   : > { %v773_v0 = vld [vmem:[%s970_s1 + $0x38] sm:$0xff]  ;;  %v772_v1 = vld [vmem:[%s970_s1 + $0x30] sm:$0xff]  ;;  %v771_v2 = vld [vmem:[%s970_s1 + $0x28] sm:$0xff]  ;;  %s974_s22 = smov (!%p163_p3, %s648_s22), 63 }
   0xc   : > { %370 = vmatpush.bf16.msra.mxu0 %v773_v0  ;;  %774 = vmatpush.bf16.msra.mxu1 %v773_v0  ;;  %v770_v3 = vld [vmem:[%s970_s1 + $0x20] sm:$0xff]  ;;  %v769_v4 = vld [vmem:[%s970_s1 + $0x18] sm:$0xff]  ;;  %v768_v5 = vld [vmem:[%s970_s1 + $0x10] sm:$0xff]  ;;  %s649_s29 = sshll.u32 %s974_s22, 2  ;;  %s651_s10 = sshll.u32 %s974_s22, 3 }
   0xd   : > { %775 = vmatpush.bf16.msra.mxu2 %v773_v0  ;;  %776 = vmatpush.bf16.msra.mxu3 %v773_v0  ;;  %v767_v6 = vld [vmem:[%s970_s1 + $0x8] sm:$0xff]  ;;  %v766_v7 = vld [vmem:[%s970_s1] sm:$0xff]  ;;  %s873_s7 = scalar_lea.vmem %s969_s0, %s649_s29  ;;  %s902_s14 = scalar_lea.vmem %s972_s3, %s651_s10 }
   0xe   : > { %v750_v8 = vld [vmem:[%s873_s7] sm:$0xff]  ;;  %v751_v12 = vld [vmem:[%s873_s7 + $0x8] sm:$0xff]  ;;  %v752_v16 = vld [vmem:[%s873_s7 + $0x10] sm:$0xff] }
   0xf   : > { %v754_v9 = vld [vmem:[%s873_s7 + $0x20] sm:$0xff]  ;;  %v755_v13 = vld [vmem:[%s873_s7 + $0x28] sm:$0xff]  ;;  %v756_v17 = vld [vmem:[%s873_s7 + $0x30] sm:$0xff] }
  0x10   : > { %371 = vmatpush.bf16.msra.mxu0 %v772_v1  ;;  %777 = vmatpush.bf16.msra.mxu1 %v772_v1  ;;  %v758_v10 = vld [vmem:[%s873_s7 + $0x40] sm:$0xff]  ;;  %v759_v14 = vld [vmem:[%s873_s7 + $0x48] sm:$0xff]  ;;  %v760_v18 = vld [vmem:[%s873_s7 + $0x50] sm:$0xff] }
  0x11   : > { %778 = vmatpush.bf16.msra.mxu2 %v772_v1  ;;  %779 = vmatpush.bf16.msra.mxu3 %v772_v1  ;;  %v762_v11 = vld [vmem:[%s873_s7 + $0x60] sm:$0xff]  ;;  %v763_v15 = vld [vmem:[%s873_s7 + $0x68] sm:$0xff]  ;;  %v764_v19 = vld [vmem:[%s873_s7 + $0x70] sm:$0xff] }
  0x12   : > { %v753_v20 = vld [vmem:[%s873_s7 + $0x18] sm:$0xff]  ;;  %v894_v24 = vld [vmem:[%s971_s2] ss:$0 sm:$0xff] }
  0x13   : > { %v757_v21 = vld [vmem:[%s873_s7 + $0x38] sm:$0xff] }
  0x14   : > { %372 = vmatpush.bf16.msra.mxu0 %v771_v2  ;;  %780 = vmatpush.bf16.msra.mxu1 %v771_v2  ;;  %v761_v22 = vld [vmem:[%s873_s7 + $0x58] sm:$0xff] }
  0x15   : > { %781 = vmatpush.bf16.msra.mxu2 %v771_v2  ;;  %782 = vmatpush.bf16.msra.mxu3 %v771_v2  ;;  %v765_v23 = vld [vmem:[%s873_s7 + $0x78] sm:$0xff] }
  0x18   : > { %373 = vmatpush.bf16.msra.mxu0 %v770_v3  ;;  %783 = vmatpush.bf16.msra.mxu1 %v770_v3 }
  0x19   : > { %784 = vmatpush.bf16.msra.mxu2 %v770_v3  ;;  %785 = vmatpush.bf16.msra.mxu3 %v770_v3 }
  0x1c   : > { %374 = vmatpush.bf16.msra.mxu0 %v769_v4  ;;  %786 = vmatpush.bf16.msra.mxu1 %v769_v4 }
  0x1d   : > { %787 = vmatpush.bf16.msra.mxu2 %v769_v4  ;;  %788 = vmatpush.bf16.msra.mxu3 %v769_v4 }
  0x20   : > { %375 = vmatpush.bf16.msra.mxu0 %v768_v5  ;;  %789 = vmatpush.bf16.msra.mxu1 %v768_v5 }
  0x21   : > { %790 = vmatpush.bf16.msra.mxu2 %v768_v5  ;;  %791 = vmatpush.bf16.msra.mxu3 %v768_v5 }
  0x24   : > { %376 = vmatpush.bf16.msra.mxu0 %v767_v6  ;;  %792 = vmatpush.bf16.msra.mxu1 %v767_v6 }
  0x25   : > { %793 = vmatpush.bf16.msra.mxu2 %v767_v6  ;;  %794 = vmatpush.bf16.msra.mxu3 %v767_v6 }
  0x28   : > { %377 = vmatpush.bf16.msra.mxu0 %v766_v7  ;;  %795 = vmatpush.bf16.msra.mxu1 %v766_v7 }
  0x29   : > { %796 = vmatpush.bf16.msra.mxu2 %v766_v7  ;;  %797 = vmatpush.bf16.msra.mxu3 %v766_v7 }
  0x2b   : > { %378 = vmatmul.bf16.vlgmr.msra.gmra.mxu0 %v750_v8  ;;  %398 = vmatmul.bf16.vlgmr.msra.gmra.mxu1 %v754_v9 }
  0x2c   : > { %418 = vmatmul.bf16.vlgmr.msra.gmra.mxu2 %v758_v10  ;;  %438 = vmatmul.bf16.vlgmr.msra.gmra.mxu3 %v762_v11 }
  0x3b   : > { %383 = vmatmul.bf16.gmra.mxu0 %v751_v12  ;;  %403 = vmatmul.bf16.gmra.mxu1 %v755_v13 }
  0x3c   : > { %423 = vmatmul.bf16.gmra.mxu2 %v759_v14  ;;  %443 = vmatmul.bf16.gmra.mxu3 %v763_v15 }
  0x4b   : > { %388 = vmatmul.bf16.gmra.mxu0 %v752_v16  ;;  %408 = vmatmul.bf16.gmra.mxu1 %v756_v17 }
  0x4c   : > { %428 = vmatmul.bf16.gmra.mxu2 %v760_v18  ;;  %448 = vmatmul.bf16.gmra.mxu3 %v764_v19 }
  0x5b   : > { %393 = vmatmul.bf16.gmra.mxu0 %v753_v20  ;;  %413 = vmatmul.bf16.gmra.mxu1 %v757_v21 }
  0x5c   : > { %433 = vmatmul.bf16.gmra.mxu2 %v761_v22  ;;  %453 = vmatmul.bf16.gmra.mxu3 %v765_v23 }
  0xa8   : > { %v379_v25 = vpop.f32.mrf.mxu0  ;;  %v399_v26 = vpop.f32.mrf.mxu1 }
  0xa9   : > { %v380_v27 = vadd.f32 %v894_v24, %v379_v25  ;;  %v400_v28 = vadd.f32 %v894_v24, %v399_v26 }
  0xab   : > { %vm459_vm0 = vcmp.gt.f32.partialorder %v380_v27, 0.0  ;;  %v491_v29 = vmul.f32 0.2, %v380_v27  ;;  %vm467_vm1 = vcmp.gt.f32.partialorder %v400_v28, 0.0  ;;  %v499_v30 = vmul.f32 0.2, %v400_v28 }
  0xad   : > { %v523_v31 = vsel %vm459_vm0, %v380_v27, %v491_v29  ;;  %v531_v32 = vsel %vm467_vm1, %v400_v28, %v499_v30 }
  0xae   : > { %555 = vst [vmem:[%s902_s14] sm:$0xff] %v523_v31 }
  0xaf   : > { %563 = vst [vmem:[%s902_s14 + $0x40] sm:$0xff] %v531_v32  ;;  %v419_v33 = vpop.f32.mrf.mxu2  ;;  %v439_v34 = vpop.f32.mrf.mxu3 }
  0xb0   : > { %v420_v35 = vadd.f32 %v894_v24, %v419_v33  ;;  %v440_v36 = vadd.f32 %v894_v24, %v439_v34  ;;  %v381_v37 = vpop.f32.mrf.mxu0  ;;  %v401_v38 = vpop.f32.mrf.mxu1 }
  0xb1   : > { %v382_v39 = vadd.f32 %v894_v24, %v381_v37  ;;  %v402_v40 = vadd.f32 %v894_v24, %v401_v38 }
  0xb2   : > { %vm475_vm2 = vcmp.gt.f32.partialorder %v420_v35, 0.0  ;;  %v507_v41 = vmul.f32 0.2, %v420_v35  ;;  %vm483_vm3 = vcmp.gt.f32.partialorder %v440_v36, 0.0  ;;  %v515_v42 = vmul.f32 0.2, %v440_v36 }
  0xb3   : > { %vm460_vm4 = vcmp.gt.f32.partialorder %v382_v39, 0.0  ;;  %v492_v43 = vmul.f32 0.2, %v382_v39  ;;  %vm468_vm5 = vcmp.gt.f32.partialorder %v402_v40, 0.0  ;;  %v500_v44 = vmul.f32 0.2, %v402_v40 }
  0xb4   : > { %v539_v45 = vsel %vm475_vm2, %v420_v35, %v507_v41  ;;  %v547_v46 = vsel %vm483_vm3, %v440_v36, %v515_v42 }
  0xb5   : > { %571 = vst [vmem:[%s902_s14 + $0x80] sm:$0xff] %v539_v45  ;;  %v524_v47 = vsel %vm460_vm4, %v382_v39, %v492_v43  ;;  %v532_v48 = vsel %vm468_vm5, %v402_v40, %v500_v44 }
  0xb6   : > { %579 = vst [vmem:[%s902_s14 + $0xc0] sm:$0xff] %v547_v46 }
  0xb7   : > { %556 = vst [vmem:[%s902_s14 + $0x8] sm:$0xff] %v524_v47  ;;  %v421_v49 = vpop.f32.mrf.mxu2  ;;  %v441_v50 = vpop.f32.mrf.mxu3 }
  0xb8   : > { %564 = vst [vmem:[%s902_s14 + $0x48] sm:$0xff] %v532_v48  ;;  %v422_v51 = vadd.f32 %v894_v24, %v421_v49  ;;  %v442_v52 = vadd.f32 %v894_v24, %v441_v50  ;;  %v384_v53 = vpop.f32.mrf.mxu0  ;;  %v404_v54 = vpop.f32.mrf.mxu1 }
  0xb9   : > { %v385_v55 = vadd.f32 %v894_v24, %v384_v53  ;;  %v405_v56 = vadd.f32 %v894_v24, %v404_v54 }
  0xba   : > { %vm476_vm6 = vcmp.gt.f32.partialorder %v422_v51, 0.0  ;;  %v508_v57 = vmul.f32 0.2, %v422_v51  ;;  %vm484_vm7 = vcmp.gt.f32.partialorder %v442_v52, 0.0  ;;  %v516_v58 = vmul.f32 0.2, %v442_v52 }
  0xbb   : > { %vm461_vm8 = vcmp.gt.f32.partialorder %v385_v55, 0.0  ;;  %v493_v59 = vmul.f32 0.2, %v385_v55  ;;  %vm469_vm9 = vcmp.gt.f32.partialorder %v405_v56, 0.0  ;;  %v501_v60 = vmul.f32 0.2, %v405_v56 }
  0xbc   : > { %v540_v61 = vsel %vm476_vm6, %v422_v51, %v508_v57  ;;  %v548_v62 = vsel %vm484_vm7, %v442_v52, %v516_v58 }
  0xbd   : > { %572 = vst [vmem:[%s902_s14 + $0x88] sm:$0xff] %v540_v61  ;;  %v525_v63 = vsel %vm461_vm8, %v385_v55, %v493_v59  ;;  %v533_v0 = vsel %vm469_vm9, %v405_v56, %v501_v60 }
  0xbe   : > { %580 = vst [vmem:[%s902_s14 + $0xc8] sm:$0xff] %v548_v62 }
  0xbf   : > { %557 = vst [vmem:[%s902_s14 + $0x10] sm:$0xff] %v525_v63  ;;  %v424_v1 = vpop.f32.mrf.mxu2  ;;  %v444_v2 = vpop.f32.mrf.mxu3 }
  0xc0   : > { %565 = vst [vmem:[%s902_s14 + $0x50] sm:$0xff] %v533_v0  ;;  %v425_v3 = vadd.f32 %v894_v24, %v424_v1  ;;  %v445_v4 = vadd.f32 %v894_v24, %v444_v2  ;;  %v386_v5 = vpop.f32.mrf.mxu0  ;;  %v406_v6 = vpop.f32.mrf.mxu1 }
  0xc1   : > { %v387_v7 = vadd.f32 %v894_v24, %v386_v5  ;;  %v407_v8 = vadd.f32 %v894_v24, %v406_v6 }
  0xc2   : > { %vm477_vm10 = vcmp.gt.f32.partialorder %v425_v3, 0.0  ;;  %v509_v9 = vmul.f32 0.2, %v425_v3  ;;  %vm485_vm11 = vcmp.gt.f32.partialorder %v445_v4, 0.0  ;;  %v517_v10 = vmul.f32 0.2, %v445_v4 }
  0xc3   : > { %vm462_vm12 = vcmp.gt.f32.partialorder %v387_v7, 0.0  ;;  %v494_v11 = vmul.f32 0.2, %v387_v7  ;;  %vm470_vm13 = vcmp.gt.f32.partialorder %v407_v8, 0.0  ;;  %v502_v12 = vmul.f32 0.2, %v407_v8 }
  0xc4   : > { %v541_v13 = vsel %vm477_vm10, %v425_v3, %v509_v9  ;;  %v549_v14 = vsel %vm485_vm11, %v445_v4, %v517_v10 }
  0xc5   : > { %573 = vst [vmem:[%s902_s14 + $0x90] sm:$0xff] %v541_v13  ;;  %v526_v15 = vsel %vm462_vm12, %v387_v7, %v494_v11  ;;  %v534_v16 = vsel %vm470_vm13, %v407_v8, %v502_v12 }
  0xc6   : > { %581 = vst [vmem:[%s902_s14 + $0xd0] sm:$0xff] %v549_v14 }
  0xc7   : > { %558 = vst [vmem:[%s902_s14 + $0x18] sm:$0xff] %v526_v15  ;;  %v426_v17 = vpop.f32.mrf.mxu2  ;;  %v446_v18 = vpop.f32.mrf.mxu3 }
  0xc8   : > { %566 = vst [vmem:[%s902_s14 + $0x58] sm:$0xff] %v534_v16  ;;  %v427_v19 = vadd.f32 %v894_v24, %v426_v17  ;;  %v447_v20 = vadd.f32 %v894_v24, %v446_v18  ;;  %v389_v21 = vpop.f32.mrf.mxu0  ;;  %v409_v22 = vpop.f32.mrf.mxu1 }
  0xc9   : > { %v390_v23 = vadd.f32 %v894_v24, %v389_v21  ;;  %v410_v25 = vadd.f32 %v894_v24, %v409_v22 }
  0xca   : > { %vm478_vm14 = vcmp.gt.f32.partialorder %v427_v19, 0.0  ;;  %v510_v26 = vmul.f32 0.2, %v427_v19  ;;  %vm486_vm15 = vcmp.gt.f32.partialorder %v447_v20, 0.0  ;;  %v518_v27 = vmul.f32 0.2, %v447_v20 }
  0xcb   : > { %vm463_vm0 = vcmp.gt.f32.partialorder %v390_v23, 0.0  ;;  %v495_v28 = vmul.f32 0.2, %v390_v23  ;;  %vm471_vm1 = vcmp.gt.f32.partialorder %v410_v25, 0.0  ;;  %v503_v29 = vmul.f32 0.2, %v410_v25 }
  0xcc   : > { %v542_v30 = vsel %vm478_vm14, %v427_v19, %v510_v26  ;;  %v550_v31 = vsel %vm486_vm15, %v447_v20, %v518_v27 }
  0xcd   : > { %574 = vst [vmem:[%s902_s14 + $0x98] sm:$0xff] %v542_v30  ;;  %v527_v32 = vsel %vm463_vm0, %v390_v23, %v495_v28  ;;  %v535_v33 = vsel %vm471_vm1, %v410_v25, %v503_v29 }
  0xce   : > { %582 = vst [vmem:[%s902_s14 + $0xd8] sm:$0xff] %v550_v31 }
  0xcf   : > { %559 = vst [vmem:[%s902_s14 + $0x20] sm:$0xff] %v527_v32  ;;  %v429_v34 = vpop.f32.mrf.mxu2  ;;  %v449_v35 = vpop.f32.mrf.mxu3 }
  0xd0   : > { %567 = vst [vmem:[%s902_s14 + $0x60] sm:$0xff] %v535_v33  ;;  %v430_v36 = vadd.f32 %v894_v24, %v429_v34  ;;  %v450_v37 = vadd.f32 %v894_v24, %v449_v35  ;;  %v391_v38 = vpop.f32.mrf.mxu0  ;;  %v411_v39 = vpop.f32.mrf.mxu1 }
  0xd1   : > { %v392_v40 = vadd.f32 %v894_v24, %v391_v38  ;;  %v412_v41 = vadd.f32 %v894_v24, %v411_v39 }
  0xd2   : > { %vm479_vm2 = vcmp.gt.f32.partialorder %v430_v36, 0.0  ;;  %v511_v42 = vmul.f32 0.2, %v430_v36  ;;  %vm487_vm3 = vcmp.gt.f32.partialorder %v450_v37, 0.0  ;;  %v519_v43 = vmul.f32 0.2, %v450_v37 }
  0xd3   : > { %vm464_vm4 = vcmp.gt.f32.partialorder %v392_v40, 0.0  ;;  %v496_v44 = vmul.f32 0.2, %v392_v40  ;;  %vm472_vm5 = vcmp.gt.f32.partialorder %v412_v41, 0.0  ;;  %v504_v45 = vmul.f32 0.2, %v412_v41 }
  0xd4   : > { %v543_v46 = vsel %vm479_vm2, %v430_v36, %v511_v42  ;;  %v551_v47 = vsel %vm487_vm3, %v450_v37, %v519_v43 }
  0xd5   : > { %575 = vst [vmem:[%s902_s14 + $0xa0] sm:$0xff] %v543_v46  ;;  %v528_v48 = vsel %vm464_vm4, %v392_v40, %v496_v44  ;;  %v536_v49 = vsel %vm472_vm5, %v412_v41, %v504_v45 }
  0xd6   : > { %583 = vst [vmem:[%s902_s14 + $0xe0] sm:$0xff] %v551_v47 }
  0xd7   : > { %560 = vst [vmem:[%s902_s14 + $0x28] sm:$0xff] %v528_v48  ;;  %v431_v50 = vpop.f32.mrf.mxu2  ;;  %v451_v51 = vpop.f32.mrf.mxu3 }
  0xd8   : > { %568 = vst [vmem:[%s902_s14 + $0x68] sm:$0xff] %v536_v49  ;;  %v432_v52 = vadd.f32 %v894_v24, %v431_v50  ;;  %v452_v53 = vadd.f32 %v894_v24, %v451_v51  ;;  %v394_v54 = vpop.f32.mrf.mxu0  ;;  %v414_v55 = vpop.f32.mrf.mxu1 }
  0xd9   : > { %v395_v56 = vadd.f32 %v894_v24, %v394_v54  ;;  %v415_v57 = vadd.f32 %v894_v24, %v414_v55 }
  0xda   : > { %vm480_vm6 = vcmp.gt.f32.partialorder %v432_v52, 0.0  ;;  %v512_v58 = vmul.f32 0.2, %v432_v52  ;;  %vm488_vm7 = vcmp.gt.f32.partialorder %v452_v53, 0.0  ;;  %v520_v59 = vmul.f32 0.2, %v452_v53 }
  0xdb   : > { %vm465_vm8 = vcmp.gt.f32.partialorder %v395_v56, 0.0  ;;  %v497_v60 = vmul.f32 0.2, %v395_v56  ;;  %vm473_vm9 = vcmp.gt.f32.partialorder %v415_v57, 0.0  ;;  %v505_v61 = vmul.f32 0.2, %v415_v57 }
  0xdc   : > { %v544_v62 = vsel %vm480_vm6, %v432_v52, %v512_v58  ;;  %v552_v63 = vsel %vm488_vm7, %v452_v53, %v520_v59 }
  0xdd   : > { %576 = vst [vmem:[%s902_s14 + $0xa8] sm:$0xff] %v544_v62  ;;  %v529_v0 = vsel %vm465_vm8, %v395_v56, %v497_v60  ;;  %v537_v1 = vsel %vm473_vm9, %v415_v57, %v505_v61 }
  0xde   : > { %584 = vst [vmem:[%s902_s14 + $0xe8] sm:$0xff] %v552_v63 }
  0xdf   : > { %561 = vst [vmem:[%s902_s14 + $0x30] sm:$0xff] %v529_v0  ;;  %v434_v2 = vpop.f32.mrf.mxu2  ;;  %v454_v3 = vpop.f32.mrf.mxu3 }
  0xe0   : > { %569 = vst [vmem:[%s902_s14 + $0x70] sm:$0xff] %v537_v1  ;;  %v435_v4 = vadd.f32 %v894_v24, %v434_v2  ;;  %v455_v5 = vadd.f32 %v894_v24, %v454_v3  ;;  %v396_v6 = vpop.f32.mrf.mxu0  ;;  %v416_v7 = vpop.f32.mrf.mxu1 }
  0xe1   : > { %v397_v8 = vadd.f32 %v894_v24, %v396_v6  ;;  %v417_v9 = vadd.f32 %v894_v24, %v416_v7 }
  0xe2   : > { %vm481_vm10 = vcmp.gt.f32.partialorder %v435_v4, 0.0  ;;  %v513_v10 = vmul.f32 0.2, %v435_v4  ;;  %vm489_vm11 = vcmp.gt.f32.partialorder %v455_v5, 0.0  ;;  %v521_v11 = vmul.f32 0.2, %v455_v5 }
  0xe3   : > { %vm466_vm12 = vcmp.gt.f32.partialorder %v397_v8, 0.0  ;;  %v498_v12 = vmul.f32 0.2, %v397_v8  ;;  %vm474_vm13 = vcmp.gt.f32.partialorder %v417_v9, 0.0  ;;  %v506_v13 = vmul.f32 0.2, %v417_v9 }
  0xe4   : > { %v545_v14 = vsel %vm481_vm10, %v435_v4, %v513_v10  ;;  %v553_v15 = vsel %vm489_vm11, %v455_v5, %v521_v11 }
  0xe5   : > { %577 = vst [vmem:[%s902_s14 + $0xb0] sm:$0xff] %v545_v14  ;;  %v530_v16 = vsel %vm466_vm12, %v397_v8, %v498_v12  ;;  %v538_v17 = vsel %vm474_vm13, %v417_v9, %v506_v13 }
  0xe6   : > { %585 = vst [vmem:[%s902_s14 + $0xf0] sm:$0xff] %v553_v15 }
  0xe7   : > { %562 = vst [vmem:[%s902_s14 + $0x38] sm:$0xff] %v530_v16  ;;  %v436_v18 = vpop.f32.mrf.mxu2  ;;  %v456_v19 = vpop.f32.mrf.mxu3 }
  0xe8   : > { %570 = vst [vmem:[%s902_s14 + $0x78] sm:$0xff] %v538_v17  ;;  %v437_v20 = vadd.f32 %v894_v24, %v436_v18  ;;  %v457_v21 = vadd.f32 %v894_v24, %v456_v19 }
  0xea   : > { %vm482_vm14 = vcmp.gt.f32.partialorder %v437_v20, 0.0  ;;  %v514_v22 = vmul.f32 0.2, %v437_v20  ;;  %vm490_vm15 = vcmp.gt.f32.partialorder %v457_v21, 0.0  ;;  %v522_v23 = vmul.f32 0.2, %v457_v21 }
  0xec   : > { %v546_v25 = vsel %vm482_vm14, %v437_v20, %v514_v22  ;;  %v554_v26 = vsel %vm490_vm15, %v457_v21, %v522_v23 }
  0xed   : > { %578 = vst [vmem:[%s902_s14 + $0xb8] sm:$0xff] %v546_v25 }
  0xee   : > { %586 = vst [vmem:[%s902_s14 + $0xf8] sm:$0xff] %v554_v26 }
  0xef PF: > { %s13_s12 = sadd.s32 1, %s813_s12  }
  0xf0   : > { %p10_p4 = scmp.ge.s32.totalorder %s13_s12, 4  }
  0xf2   :  { %12 = sbr.rel (!%p10_p4) target bundleno = 1 (0x1), region = 62 }

// kernel: _forward_impl.5
= control target key start
LH: loop header
LB: loop body
LE: loop exit
PB: predicated region body
PF: predicated region fallthrough
CT: control target
= control target key end

     0   :  { %s986_s1 = inlined_call_operand.vmem [shape: bf16[256,128], index: 1, kind: input, shape index: {}]   ;;  %s987_s2 = inlined_call_operand.vmem [shape: f32[1,128], index: 2, kind: input, shape index: {}]   ;;  %s988_s0 = inlined_call_operand.vmem [shape: bf16[128,256], index: 0, kind: input, shape index: {}]   ;;  %s989_s3 = inlined_call_operand.vmem [shape: f32[128,128], index: 3, kind: output, shape index: {0}]   ;;  %s990_s4 = inlined_call_operand.vmem [shape: f32[8,128], index: 4, kind: output, shape index: {1}]   ;;  %s991_s5 = inlined_call_operand.vmem [shape: f32[8,128], index: 5, kind: output, shape index: {2}]  }
   0x1   :  { %v681_v0 = vld [vmem:[%s986_s1 + $0x38] sm:$0xff]  ;;  %v680_v2 = vld [vmem:[%s986_s1 + $0x30] sm:$0xff]  ;;  %v679_v4 = vld [vmem:[%s986_s1 + $0x28] sm:$0xff] }
   0x2   :  { %v689_v1 = vld [vmem:[%s986_s1 + $0x78] sm:$0xff]  ;;  %245 = vmatpush.bf16.msra.mxu0 %v681_v0  ;;  %v688_v3 = vld [vmem:[%s986_s1 + $0x70] sm:$0xff]  ;;  %690 = vmatpush.bf16.msra.mxu2 %v681_v0  ;;  %v687_v5 = vld [vmem:[%s986_s1 + $0x68] sm:$0xff] }
   0x3   :  { %294 = vmatpush.bf16.msra.mxu1 %v689_v1  ;;  %698 = vmatpush.bf16.msra.mxu3 %v689_v1  ;;  %v678_v6 = vld [vmem:[%s986_s1 + $0x20] sm:$0xff]  ;;  %v677_v8 = vld [vmem:[%s986_s1 + $0x18] sm:$0xff]  ;;  %v676_v10 = vld [vmem:[%s986_s1 + $0x10] sm:$0xff] }
   0x4   :  { %v686_v7 = vld [vmem:[%s986_s1 + $0x60] sm:$0xff]  ;;  %v685_v9 = vld [vmem:[%s986_s1 + $0x58] sm:$0xff]  ;;  %v684_v11 = vld [vmem:[%s986_s1 + $0x50] sm:$0xff] }
   0x5   :  { %v675_v12 = vld [vmem:[%s986_s1 + $0x8] sm:$0xff]  ;;  %v674_v14 = vld [vmem:[%s986_s1] sm:$0xff]  ;;  %v540_v28 = vld [vmem:[%s988_s0 + $0x10] sm:$0xf] }
   0x6   :  { %246 = vmatpush.bf16.msra.mxu0 %v680_v2  ;;  %691 = vmatpush.bf16.msra.mxu2 %v680_v2  ;;  %v683_v13 = vld [vmem:[%s986_s1 + $0x48] sm:$0xff]  ;;  %v682_v15 = vld [vmem:[%s986_s1 + $0x40] sm:$0xff]  ;;  %v661_v29 = vld [vmem:[%s988_s0 + $0x14] sm:$0xf0] }
   0x7   :  { %295 = vmatpush.bf16.msra.mxu1 %v688_v3  ;;  %699 = vmatpush.bf16.msra.mxu3 %v688_v3  ;;  %v532_v16 = vld [vmem:[%s988_s0] sm:$0xf]  ;;  %v659_v17 = vld [vmem:[%s988_s0 + $0x4] sm:$0xf0]  ;;  %v658_v18 = vld [vmem:[%s988_s0 + $0x4] sm:$0xf]  ;;  %v541_v36 = vor.u32 %v661_v29, %v540_v28 }
   0x8   :  { %v534_v19 = vld [vmem:[%s988_s0 + $0x8] sm:$0xf0]  ;;  %v564_v20 = vld [vmem:[%s988_s0 + $0x40] sm:$0xf]  ;;  %v667_v21 = vld [vmem:[%s988_s0 + $0x44] sm:$0xf0]  ;;  %v533_v24 = vor.u32 %v659_v17, %v532_v16 }
   0x9   :  { %v666_v22 = vld [vmem:[%s988_s0 + $0x44] sm:$0xf]  ;;  %v566_v23 = vld [vmem:[%s988_s0 + $0x48] sm:$0xf0]  ;;  %v537_v25 = vor.u32 %v658_v18, %v534_v19  ;;  %v565_v26 = vor.u32 %v667_v21, %v564_v20  ;;  %v660_v30 = vld [vmem:[%s988_s0 + $0x14] sm:$0xf] }
   0xa   :  { %247 = vmatpush.bf16.msra.mxu0 %v679_v4  ;;  %692 = vmatpush.bf16.msra.mxu2 %v679_v4  ;;  %v569_v27 = vor.u32 %v666_v22, %v566_v23  ;;  %v542_v31 = vld [vmem:[%s988_s0 + $0x18] sm:$0xf0]  ;;  %v572_v32 = vld [vmem:[%s988_s0 + $0x50] sm:$0xf]  ;;  %v669_v33 = vld [vmem:[%s988_s0 + $0x54] sm:$0xf0] }
   0xb   :  { %296 = vmatpush.bf16.msra.mxu1 %v687_v5  ;;  %700 = vmatpush.bf16.msra.mxu3 %v687_v5  ;;  %v668_v34 = vld [vmem:[%s988_s0 + $0x54] sm:$0xf]  ;;  %v574_v35 = vld [vmem:[%s988_s0 + $0x58] sm:$0xf0]  ;;  %v545_v37 = vor.u32 %v660_v30, %v542_v31  ;;  %v573_v38 = vor.u32 %v669_v33, %v572_v32  ;;  %v548_v40 = vld [vmem:[%s988_s0 + $0x20] sm:$0xf] }
   0xc   :  { %v577_v39 = vor.u32 %v668_v34, %v574_v35  ;;  %v663_v41 = vld [vmem:[%s988_s0 + $0x24] sm:$0xf0]  ;;  %v662_v42 = vld [vmem:[%s988_s0 + $0x24] sm:$0xf]  ;;  %v550_v43 = vld [vmem:[%s988_s0 + $0x28] sm:$0xf0] }
   0xd   :  { %v580_v44 = vld [vmem:[%s988_s0 + $0x60] sm:$0xf]  ;;  %v671_v45 = vld [vmem:[%s988_s0 + $0x64] sm:$0xf0]  ;;  %v670_v46 = vld [vmem:[%s988_s0 + $0x64] sm:$0xf]  ;;  %v549_v48 = vor.u32 %v663_v41, %v548_v40  ;;  %v553_v49 = vor.u32 %v662_v42, %v550_v43 }
   0xe   :  { %248 = vmatpush.bf16.msra.mxu0 %v678_v6  ;;  %693 = vmatpush.bf16.msra.mxu2 %v678_v6  ;;  %v582_v47 = vld [vmem:[%s988_s0 + $0x68] sm:$0xf0]  ;;  %v581_v50 = vor.u32 %v671_v45, %v580_v44  ;;  %v556_v52 = vld [vmem:[%s988_s0 + $0x30] sm:$0xf]  ;;  %v665_v53 = vld [vmem:[%s988_s0 + $0x34] sm:$0xf0] }
   0xf   :  { %297 = vmatpush.bf16.msra.mxu1 %v686_v7  ;;  %701 = vmatpush.bf16.msra.mxu3 %v686_v7  ;;  %v585_v51 = vor.u32 %v670_v46, %v582_v47  ;;  %v664_v54 = vld [vmem:[%s988_s0 + $0x34] sm:$0xf]  ;;  %v558_v55 = vld [vmem:[%s988_s0 + $0x38] sm:$0xf0]  ;;  %v588_v56 = vld [vmem:[%s988_s0 + $0x70] sm:$0xf]  ;;  %v557_v60 = vor.u32 %v665_v53, %v556_v52 }
  0x10   :  { %v673_v57 = vld [vmem:[%s988_s0 + $0x74] sm:$0xf0]  ;;  %v672_v58 = vld [vmem:[%s988_s0 + $0x74] sm:$0xf]  ;;  %v590_v59 = vld [vmem:[%s988_s0 + $0x78] sm:$0xf0]  ;;  %v561_v61 = vor.u32 %v664_v54, %v558_v55 }
  0x11   :  { %v589_v62 = vor.u32 %v673_v57, %v588_v56  ;;  %v593_v63 = vor.u32 %v672_v58, %v590_v59  ;;  %v884_v0 = vld [vmem:[%s987_s2] ss:$0 sm:$0xff] }
  0x12   :  { %249 = vmatpush.bf16.msra.mxu0 %v677_v8  ;;  %694 = vmatpush.bf16.msra.mxu2 %v677_v8 }
  0x13   :  { %298 = vmatpush.bf16.msra.mxu1 %v685_v9  ;;  %702 = vmatpush.bf16.msra.mxu3 %v685_v9 }
  0x16   :  { %250 = vmatpush.bf16.msra.mxu0 %v676_v10  ;;  %695 = vmatpush.bf16.msra.mxu2 %v676_v10 }
  0x17   :  { %299 = vmatpush.bf16.msra.mxu1 %v684_v11  ;;  %703 = vmatpush.bf16.msra.mxu3 %v684_v11 }
  0x1a   :  { %251 = vmatpush.bf16.msra.mxu0 %v675_v12  ;;  %696 = vmatpush.bf16.msra.mxu2 %v675_v12 }
  0x1b   :  { %300 = vmatpush.bf16.msra.mxu1 %v683_v13  ;;  %704 = vmatpush.bf16.msra.mxu3 %v683_v13 }
  0x1e   :  { %252 = vmatpush.bf16.msra.mxu0 %v674_v14  ;;  %697 = vmatpush.bf16.msra.mxu2 %v674_v14 }
  0x1f   :  { %301 = vmatpush.bf16.msra.mxu1 %v682_v15  ;;  %705 = vmatpush.bf16.msra.mxu3 %v682_v15 }
  0x21   :  { %253 = vmatmul.bf16.vlgmr.msra.gmra.mxu0 %v533_v24  ;;  %273 = vmatmul.bf16.vlgmr.msra.gmra.mxu2 %v565_v26 }
  0x22   :  { %302 = vmatmul.bf16.vlgmr.msra.gmra.mxu1 %v537_v25  ;;  %322 = vmatmul.bf16.vlgmr.msra.gmra.mxu3 %v569_v27 }
  0x31   :  { %258 = vmatmul.bf16.gmra.mxu0 %v541_v36  ;;  %278 = vmatmul.bf16.gmra.mxu2 %v573_v38 }
  0x32   :  { %307 = vmatmul.bf16.gmra.mxu1 %v545_v37  ;;  %327 = vmatmul.bf16.gmra.mxu3 %v577_v39 }
  0x41   :  { %263 = vmatmul.bf16.gmra.mxu0 %v549_v48  ;;  %283 = vmatmul.bf16.gmra.mxu2 %v581_v50 }
  0x42   :  { %312 = vmatmul.bf16.gmra.mxu1 %v553_v49  ;;  %332 = vmatmul.bf16.gmra.mxu3 %v585_v51 }
  0x51   :  { %268 = vmatmul.bf16.gmra.mxu0 %v557_v60  ;;  %288 = vmatmul.bf16.gmra.mxu2 %v589_v62 }
  0x52   :  { %317 = vmatmul.bf16.gmra.mxu1 %v561_v61  ;;  %337 = vmatmul.bf16.gmra.mxu3 %v593_v63 }
  0x9e   :  { %v254_v1 = vpop.f32.mrf.mxu0 }
  0x9f   :  { %v303_v2 = vpop.f32.mrf.mxu1  ;;  %v255_v3 = vadd.f32 %v884_v0, %v254_v1 }
  0xa1   :  { %v304_v4 = vadd.f32 %v303_v2, %v255_v3 }
  0xa3   :  { %343 = vst [vmem:[%s989_s3] sm:$0xff] %v304_v4  ;;  %v480_v51 = vmul.f32 %v304_v4, %v304_v4 }
  0xa4   :  { %v274_v5 = vpop.f32.mrf.mxu2 }
  0xa5   :  { %v323_v6 = vpop.f32.mrf.mxu3  ;;  %v275_v8 = vadd.f32 %v884_v0, %v274_v5 }
  0xa6   :  { %v256_v7 = vpop.f32.mrf.mxu0 }
  0xa7   :  { %v305_v9 = vpop.f32.mrf.mxu1  ;;  %v257_v10 = vadd.f32 %v884_v0, %v256_v7  ;;  %v892_v11 = vadd.f32 %v323_v6, %v275_v8 }
  0xa9   :  { %v306_v12 = vadd.f32 %v305_v9, %v257_v10  ;;  %351 = vst [vmem:[%s989_s3 + $0x40] sm:$0xff] %v892_v11 }
  0xab   :  { %344 = vst [vmem:[%s989_s3 + $0x8] sm:$0xff] %v306_v12  ;;  %v481_v45 = vmul.f32 %v306_v12, %v306_v12  ;;  %v458_v52 = vadd.f32 %v306_v12, %v304_v4 }
  0xac   :  { %v276_v13 = vpop.f32.mrf.mxu2 }
  0xad   :  { %v325_v14 = vpop.f32.mrf.mxu3  ;;  %v277_v16 = vadd.f32 %v884_v0, %v276_v13  ;;  %v496_v56 = vadd.f32 %v481_v45, %v480_v51 }
  0xae   :  { %v259_v15 = vpop.f32.mrf.mxu0 }
  0xaf   :  { %v308_v17 = vpop.f32.mrf.mxu1  ;;  %v260_v18 = vadd.f32 %v884_v0, %v259_v15  ;;  %v903_v19 = vadd.f32 %v325_v14, %v277_v16 }
  0xb1   :  { %v309_v20 = vadd.f32 %v308_v17, %v260_v18  ;;  %352 = vst [vmem:[%s989_s3 + $0x48] sm:$0xff] %v903_v19 }
  0xb3   :  { %345 = vst [vmem:[%s989_s3 + $0x10] sm:$0xff] %v309_v20  ;;  %v482_v53 = vmul.f32 %v309_v20, %v309_v20  ;;  %v459_v57 = vadd.f32 %v458_v52, %v309_v20 }
  0xb4   :  { %v279_v21 = vpop.f32.mrf.mxu2 }
  0xb5   :  { %v328_v22 = vpop.f32.mrf.mxu3  ;;  %v280_v24 = vadd.f32 %v884_v0, %v279_v21  ;;  %v497_v60 = vadd.f32 %v496_v56, %v482_v53  ;;  %v488_v21 = vmul.f32 %v892_v11, %v892_v11 }
  0xb6   :  { %v261_v23 = vpop.f32.mrf.mxu0 }
  0xb7   :  { %v310_v25 = vpop.f32.mrf.mxu1  ;;  %v262_v26 = vadd.f32 %v884_v0, %v261_v23  ;;  %v914_v27 = vadd.f32 %v328_v22, %v280_v24 }
  0xb9   :  { %v311_v28 = vadd.f32 %v310_v25, %v262_v26  ;;  %353 = vst [vmem:[%s989_s3 + $0x50] sm:$0xff] %v914_v27 }
  0xbb   :  { %346 = vst [vmem:[%s989_s3 + $0x18] sm:$0xff] %v311_v28  ;;  %v483_v58 = vmul.f32 %v311_v28, %v311_v28  ;;  %v460_v61 = vadd.f32 %v459_v57, %v311_v28  ;;  %v489_v28 = vmul.f32 %v903_v19, %v903_v19 }
  0xbc   :  { %v281_v29 = vpop.f32.mrf.mxu2 }
  0xbd   :  { %v330_v30 = vpop.f32.mrf.mxu3  ;;  %v282_v32 = vadd.f32 %v884_v0, %v281_v29  ;;  %v498_v63 = vadd.f32 %v497_v60, %v483_v58 }
  0xbe   :  { %v264_v31 = vpop.f32.mrf.mxu0 }
  0xbf   :  { %v313_v33 = vpop.f32.mrf.mxu1  ;;  %v265_v34 = vadd.f32 %v884_v0, %v264_v31  ;;  %v925_v35 = vadd.f32 %v330_v30, %v282_v32  ;;  %v490_v32 = vmul.f32 %v914_v27, %v914_v27 }
  0xc1   :  { %v314_v36 = vadd.f32 %v313_v33, %v265_v34  ;;  %354 = vst [vmem:[%s989_s3 + $0x58] sm:$0xff] %v925_v35 }
  0xc3   :  { %347 = vst [vmem:[%s989_s3 + $0x20] sm:$0xff] %v314_v36  ;;  %v484_v62 = vmul.f32 %v314_v36, %v314_v36  ;;  %v461_v1 = vadd.f32 %v460_v61, %v314_v36 }
  0xc4   :  { %v284_v37 = vpop.f32.mrf.mxu2 }
  0xc5   :  { %v333_v38 = vpop.f32.mrf.mxu3  ;;  %v285_v40 = vadd.f32 %v884_v0, %v284_v37  ;;  %v499_v7 = vadd.f32 %v498_v63, %v484_v62 }
  0xc6   :  { %v266_v39 = vpop.f32.mrf.mxu0 }
  0xc7   :  { %v315_v41 = vpop.f32.mrf.mxu1  ;;  %v267_v42 = vadd.f32 %v884_v0, %v266_v39  ;;  %v936_v43 = vadd.f32 %v333_v38, %v285_v40 }
  0xc9   :  { %v316_v44 = vadd.f32 %v315_v41, %v267_v42  ;;  %355 = vst [vmem:[%s989_s3 + $0x60] sm:$0xff] %v936_v43 }
  0xcb   :  { %348 = vst [vmem:[%s989_s3 + $0x28] sm:$0xff] %v316_v44  ;;  %v485_v2 = vmul.f32 %v316_v44, %v316_v44  ;;  %v462_v8 = vadd.f32 %v461_v1, %v316_v44 }
  0xcc   :  { %v286_v46 = vpop.f32.mrf.mxu2 }
  0xcd   :  { %v335_v47 = vpop.f32.mrf.mxu3  ;;  %v287_v49 = vadd.f32 %v884_v0, %v286_v46  ;;  %v500_v14 = vadd.f32 %v499_v7, %v485_v2 }
  0xce   :  { %v269_v48 = vpop.f32.mrf.mxu0 }
  0xcf   :  { %v318_v50 = vpop.f32.mrf.mxu1  ;;  %v270_v54 = vadd.f32 %v884_v0, %v269_v48  ;;  %v336_v55 = vadd.f32 %v335_v47, %v287_v49 }
  0xd1   :  { %v319_v59 = vadd.f32 %v318_v50, %v270_v54  ;;  %356 = vst [vmem:[%s989_s3 + $0x68] sm:$0xff] %v336_v55  ;;  %v493_v39 = vmul.f32 %v336_v55, %v336_v55 }
  0xd3   :  { %349 = vst [vmem:[%s989_s3 + $0x30] sm:$0xff] %v319_v59  ;;  %v486_v9 = vmul.f32 %v319_v59, %v319_v59  ;;  %v463_v15 = vadd.f32 %v462_v8, %v319_v59 }
  0xd4   :  { %v289_v3 = vpop.f32.mrf.mxu2 }
  0xd5   :  { %v338_v4 = vpop.f32.mrf.mxu3  ;;  %v290_v6 = vadd.f32 %v884_v0, %v289_v3  ;;  %v501_v17 = vadd.f32 %v500_v14, %v486_v9 }
  0xd6   :  { %v271_v5 = vpop.f32.mrf.mxu0 }
  0xd7   :  { %v272_v10 = vadd.f32 %v884_v0, %v271_v5  ;;  %v320_v12 = vpop.f32.mrf.mxu1  ;;  %v339_v13 = vadd.f32 %v338_v4, %v290_v6 }
  0xd9   :  { %v321_v16 = vadd.f32 %v320_v12, %v272_v10  ;;  %357 = vst [vmem:[%s989_s3 + $0x70] sm:$0xff] %v339_v13  ;;  %v494_v42 = vmul.f32 %v339_v13, %v339_v13 }
  0xdb   :  { %350 = vst [vmem:[%s989_s3 + $0x38] sm:$0xff] %v321_v16  ;;  %v464_v18 = vadd.f32 %v463_v15, %v321_v16  ;;  %v487_v20 = vmul.f32 %v321_v16, %v321_v16 }
  0xdc   :  { %v291_v24 = vpop.f32.mrf.mxu2 }
  0xdd   :  { %v465_v22 = vadd.f32 %v464_v18, %v892_v11  ;;  %v502_v23 = vadd.f32 %v501_v17, %v487_v20  ;;  %v340_v25 = vpop.f32.mrf.mxu3  ;;  %v292_v26 = vadd.f32 %v884_v0, %v291_v24  ;;  %v491_v0 = vmul.f32 %v925_v35, %v925_v35 }
  0xdf   :  { %v466_v29 = vadd.f32 %v465_v22, %v903_v19  ;;  %v503_v30 = vadd.f32 %v502_v23, %v488_v21  ;;  %v341_v31 = vadd.f32 %v340_v25, %v292_v26  ;;  %v492_v19 = vmul.f32 %v936_v43, %v936_v43 }
  0xe1   :  { %v467_v33 = vadd.f32 %v466_v29, %v914_v27  ;;  %v504_v34 = vadd.f32 %v503_v30, %v489_v28  ;;  %358 = vst [vmem:[%s989_s3 + $0x78] sm:$0xff] %v341_v31  ;;  %v495_v47 = vmul.f32 %v341_v31, %v341_v31 }
  0xe3   :  { %v505_v11 = vadd.f32 %v504_v34, %v490_v32  ;;  %v468_v36 = vadd.f32 %v467_v33, %v925_v35 }
  0xe5   :  { %v469_v37 = vadd.f32 %v468_v36, %v936_v43  ;;  %v506_v38 = vadd.f32 %v505_v11, %v491_v0 }
  0xe7   :  { %v470_v40 = vadd.f32 %v469_v37, %v336_v55  ;;  %v507_v27 = vadd.f32 %v506_v38, %v492_v19 }
  0xe9   :  { %v471_v41 = vadd.f32 %v470_v40, %v339_v13  ;;  %v508_v44 = vadd.f32 %v507_v27, %v493_v39 }
  0xeb   :  { %v509_v45 = vadd.f32 %v508_v44, %v494_v42  ;;  %v472_v46 = vadd.f32 %v471_v41, %v341_v31 }
  0xed   :  { %v473_v48 = vrot.slane %v472_v46, 4  ;;  %v510_v49 = vadd.f32 %v509_v45, %v495_v47 }
  0xef   :  { %v474_v50 = vadd.f32 %v473_v48, %v472_v46  ;;  %v511_v51 = vrot.slane %v510_v49, 4 }
  0xf1   :  { %v475_v35 = vrot.slane %v474_v50, 2  ;;  %v512_v52 = vadd.f32 %v511_v51, %v510_v49 }
  0xf3   :  { %v476_v53 = vadd.f32 %v475_v35, %v474_v50  ;;  %v513_v54 = vrot.slane %v512_v52, 2 }
  0xf5   :  { %v477_v56 = vrot.slane %v476_v53, 1  ;;  %v514_v43 = vadd.f32 %v513_v54, %v512_v52 }
  0xf7   :  { %v478_v57 = vadd.f32 %v477_v56, %v476_v53  ;;  %v515_v58 = vrot.slane %v514_v43, 1 }
  0xf9   :  { %479 = vst [vmem:[%s990_s4] sm:$0xff] %v478_v57  ;;  %v516_v55 = vadd.f32 %v515_v58, %v514_v43 }
  0xfb   :  { %517 = vst [vmem:[%s991_s5] sm:$0xff] %v516_v55 }

// kernel: _forward_impl.6
= control target key start
LH: loop header
LB: loop body
LE: loop exit
PB: predicated region body
PF: predicated region fallthrough
CT: control target
= control target key end

     0   :  { %s298_s0 = inlined_call_operand.vmem [shape: f32[128,128], index: 0, kind: input, shape index: {}]   ;;  %s299_s1 = inlined_call_operand.vmem [shape: f32[1,128], index: 1, kind: input, shape index: {}]   ;;  %s300_s2 = inlined_call_operand.vmem [shape: f32[1,128], index: 2, kind: input, shape index: {}]   ;;  %s301_s3 = inlined_call_operand.vmem [shape: f32[128,128], index: 3, kind: output, shape index: {}]  }
   0x1   :  { %v14_v0 = vld [vmem:[%s298_s0] sm:$0xff]  ;;  %v15_v3 = vld [vmem:[%s298_s0 + $0x8] sm:$0xff]  ;;  %v16_v6 = vld [vmem:[%s298_s0 + $0x10] sm:$0xff] }
   0x2   :  { %v166_v1 = vld [vmem:[%s299_s1] ss:$0 sm:$0xff]  ;;  %v17_v7 = vld [vmem:[%s298_s0 + $0x18] sm:$0xff]  ;;  %v19_v12 = vld [vmem:[%s298_s0 + $0x28] sm:$0xff] }
   0x3   :  { %v171_v2 = vld [vmem:[%s300_s2] ss:$0 sm:$0xff]  ;;  %v34_v4 = vmul.f32 %v166_v1, %v14_v0  ;;  %v35_v5 = vmul.f32 %v166_v1, %v15_v3  ;;  %v36_v9 = vmul.f32 %v166_v1, %v16_v6  ;;  %v37_v10 = vmul.f32 %v166_v1, %v17_v7  ;;  %v20_v13 = vld [vmem:[%s298_s0 + $0x30] sm:$0xff]  ;;  %v21_v14 = vld [vmem:[%s298_s0 + $0x38] sm:$0xff] }
   0x4   :  { %v18_v8 = vld [vmem:[%s298_s0 + $0x20] sm:$0xff]  ;;  %v39_v17 = vmul.f32 %v166_v1, %v19_v12  ;;  %v40_v18 = vmul.f32 %v166_v1, %v20_v13  ;;  %v41_v22 = vmul.f32 %v166_v1, %v21_v14  ;;  %v23_v24 = vld [vmem:[%s298_s0 + $0x48] sm:$0xff]  ;;  %v24_v32 = vld [vmem:[%s298_s0 + $0x50] sm:$0xff] }
   0x5   :  { %v38_v11 = vmul.f32 %v166_v1, %v18_v8  ;;  %v54_v15 = vadd.f32 %v171_v2, %v34_v4  ;;  %v55_v16 = vadd.f32 %v171_v2, %v35_v5  ;;  %v56_v19 = vadd.f32 %v171_v2, %v36_v9  ;;  %v22_v23 = vld [vmem:[%s298_s0 + $0x40] sm:$0xff]  ;;  %v25_v41 = vld [vmem:[%s298_s0 + $0x58] sm:$0xff]  ;;  %v27_v52 = vld [vmem:[%s298_s0 + $0x68] sm:$0xff] }
   0x6   :  { %v57_v20 = vadd.f32 %v171_v2, %v37_v10  ;;  %v59_v35 = vadd.f32 %v171_v2, %v39_v17  ;;  %v60_v36 = vadd.f32 %v171_v2, %v40_v18  ;;  %v61_v38 = vadd.f32 %v171_v2, %v41_v22  ;;  %v26_v51 = vld [vmem:[%s298_s0 + $0x60] sm:$0xff]  ;;  %v28_v56 = vld [vmem:[%s298_s0 + $0x70] sm:$0xff]  ;;  %v29_v59 = vld [vmem:[%s298_s0 + $0x78] sm:$0xff] }
   0x7   :  { %v58_v21 = vadd.f32 %v171_v2, %v38_v11  ;;  %vm70_vm0 = vcmp.gt.f32.partialorder %v54_v15, 0.0  ;;  %v86_v25 = vmul.f32 0.2, %v54_v15  ;;  %vm71_vm1 = vcmp.gt.f32.partialorder %v55_v16, 0.0 }
   0x8   :  { %v87_v26 = vmul.f32 0.2, %v55_v16  ;;  %vm72_vm2 = vcmp.gt.f32.partialorder %v56_v19, 0.0  ;;  %v88_v27 = vmul.f32 0.2, %v56_v19  ;;  %vm73_vm3 = vcmp.gt.f32.partialorder %v57_v20, 0.0 }
   0x9   :  { %v89_v28 = vmul.f32 0.2, %v57_v20  ;;  %v102_v29 = vsel %vm70_vm0, %v54_v15, %v86_v25  ;;  %vm74_vm4 = vcmp.gt.f32.partialorder %v58_v21, 0.0  ;;  %v90_v31 = vmul.f32 0.2, %v58_v21 }
   0xa   :  { %v103_v30 = vsel %vm71_vm1, %v55_v16, %v87_v26  ;;  %118 = vst [vmem:[%s301_s3] sm:$0xff] %v102_v29  ;;  %v104_v33 = vsel %vm72_vm2, %v56_v19, %v88_v27  ;;  %v42_v39 = vmul.f32 %v166_v1, %v22_v23  ;;  %v43_v40 = vmul.f32 %v166_v1, %v23_v24 }
   0xb   :  { %v105_v34 = vsel %vm73_vm3, %v57_v20, %v89_v28  ;;  %119 = vst [vmem:[%s301_s3 + $0x8] sm:$0xff] %v103_v30  ;;  %v106_v37 = vsel %vm74_vm4, %v58_v21, %v90_v31  ;;  %vm75_vm5 = vcmp.gt.f32.partialorder %v59_v35, 0.0  ;;  %v91_v42 = vmul.f32 0.2, %v59_v35 }
   0xc   :  { %120 = vst [vmem:[%s301_s3 + $0x10] sm:$0xff] %v104_v33  ;;  %vm76_vm6 = vcmp.gt.f32.partialorder %v60_v36, 0.0  ;;  %v44_v43 = vmul.f32 %v166_v1, %v24_v32  ;;  %v92_v44 = vmul.f32 0.2, %v60_v36  ;;  %vm77_vm7 = vcmp.gt.f32.partialorder %v61_v38, 0.0 }
   0xd   :  { %121 = vst [vmem:[%s301_s3 + $0x18] sm:$0xff] %v105_v34  ;;  %v93_v45 = vmul.f32 0.2, %v61_v38  ;;  %v62_v46 = vadd.f32 %v171_v2, %v42_v39  ;;  %v107_v47 = vsel %vm75_vm5, %v59_v35, %v91_v42  ;;  %v63_v48 = vadd.f32 %v171_v2, %v43_v40 }
   0xe   :  { %122 = vst [vmem:[%s301_s3 + $0x20] sm:$0xff] %v106_v37  ;;  %v64_v49 = vadd.f32 %v171_v2, %v44_v43  ;;  %v45_v50 = vmul.f32 %v166_v1, %v25_v41  ;;  %v108_v53 = vsel %vm76_vm6, %v60_v36, %v92_v44  ;;  %v46_v62 = vmul.f32 %v166_v1, %v26_v51 }
   0xf   :  { %123 = vst [vmem:[%s301_s3 + $0x28] sm:$0xff] %v107_v47  ;;  %v109_v54 = vsel %vm77_vm7, %v61_v38, %v93_v45  ;;  %vm78_vm8 = vcmp.gt.f32.partialorder %v62_v46, 0.0  ;;  %v94_v55 = vmul.f32 0.2, %v62_v46  ;;  %vm79_vm9 = vcmp.gt.f32.partialorder %v63_v48, 0.0 }
  0x10   :  { %124 = vst [vmem:[%s301_s3 + $0x30] sm:$0xff] %v108_v53  ;;  %v95_v57 = vmul.f32 0.2, %v63_v48  ;;  %vm80_vm10 = vcmp.gt.f32.partialorder %v64_v49, 0.0  ;;  %v65_v58 = vadd.f32 %v171_v2, %v45_v50  ;;  %v96_v61 = vmul.f32 0.2, %v64_v49 }
  0x11   :  { %125 = vst [vmem:[%s301_s3 + $0x38] sm:$0xff] %v109_v54  ;;  %v110_v60 = vsel %vm78_vm8, %v62_v46, %v94_v55  ;;  %v47_v63 = vmul.f32 %v166_v1, %v27_v52  ;;  %v48_v4 = vmul.f32 %v166_v1, %v28_v56  ;;  %v66_v6 = vadd.f32 %v171_v2, %v46_v62 }
  0x12   :  { %126 = vst [vmem:[%s301_s3 + $0x40] sm:$0xff] %v110_v60  ;;  %v111_v0 = vsel %vm79_vm9, %v63_v48, %v95_v57  ;;  %vm81_vm11 = vcmp.gt.f32.partialorder %v65_v58, 0.0  ;;  %v97_v3 = vmul.f32 0.2, %v65_v58  ;;  %v112_v5 = vsel %vm80_vm10, %v64_v49, %v96_v61 }
  0x13   :  { %127 = vst [vmem:[%s301_s3 + $0x48] sm:$0xff] %v111_v0  ;;  %v67_v7 = vadd.f32 %v171_v2, %v47_v63  ;;  %v49_v8 = vmul.f32 %v166_v1, %v29_v59  ;;  %v68_v10 = vadd.f32 %v171_v2, %v48_v4  ;;  %vm82_vm12 = vcmp.gt.f32.partialorder %v66_v6, 0.0 }
  0x14   :  { %128 = vst [vmem:[%s301_s3 + $0x50] sm:$0xff] %v112_v5  ;;  %v113_v9 = vsel %vm81_vm11, %v65_v58, %v97_v3  ;;  %v98_v11 = vmul.f32 0.2, %v66_v6 }
  0x15   :  { %129 = vst [vmem:[%s301_s3 + $0x58] sm:$0xff] %v113_v9  ;;  %vm83_vm13 = vcmp.gt.f32.partialorder %v67_v7, 0.0  ;;  %v69_v12 = vadd.f32 %v171_v2, %v49_v8  ;;  %v99_v13 = vmul.f32 0.2, %v67_v7  ;;  %vm84_vm14 = vcmp.gt.f32.partialorder %v68_v10, 0.0 }
  0x16   :  { %v100_v14 = vmul.f32 0.2, %v68_v10  ;;  %v114_v1 = vsel %vm82_vm12, %v66_v6, %v98_v11 }
  0x17   :  { %vm85_vm15 = vcmp.gt.f32.partialorder %v69_v12, 0.0  ;;  %v101_v15 = vmul.f32 0.2, %v69_v12  ;;  %130 = vst [vmem:[%s301_s3 + $0x60] sm:$0xff] %v114_v1  ;;  %v115_v16 = vsel %vm83_vm13, %v67_v7, %v99_v13 }
  0x18   :  { %v116_v17 = vsel %vm84_vm14, %v68_v10, %v100_v14  ;;  %131 = vst [vmem:[%s301_s3 + $0x68] sm:$0xff] %v115_v16 }
  0x19   :  { %v117_v18 = vsel %vm85_vm15, %v69_v12, %v101_v15  ;;  %132 = vst [vmem:[%s301_s3 + $0x70] sm:$0xff] %v116_v17 }
  0x1a   :  { %133 = vst [vmem:[%s301_s3 + $0x78] sm:$0xff] %v117_v18 }

// kernel: _forward_impl.7
= control target key start
LH: loop header
LB: loop body
LE: loop exit
PB: predicated region body
PF: predicated region fallthrough
CT: control target
= control target key end

     0   :  { %s822_s1 = inlined_call_operand.vmem [shape: bf16[512,128], index: 1, kind: input, shape index: {}]   ;;  %s823_s2 = inlined_call_operand.vmem [shape: f32[1,128], index: 2, kind: input, shape index: {}]   ;;  %s824_s0 = inlined_call_operand.vmem [shape: bf16[32,512], index: 0, kind: input, shape index: {}]   ;;  %s825_s3 = inlined_call_operand.vmem [shape: f32[32,128], index: 3, kind: output, shape index: {}]  }
   0x1   :  { %v601_v0 = vld [vmem:[%s822_s1 + $0x38] sm:$0xff]  ;;  %v600_v4 = vld [vmem:[%s822_s1 + $0x30] sm:$0xff]  ;;  %v599_v8 = vld [vmem:[%s822_s1 + $0x28] sm:$0xff] }
   0x2   :  { %v609_v1 = vld [vmem:[%s822_s1 + $0x78] sm:$0xff]  ;;  %322 = vmatpush.bf16.msra.mxu0 %v601_v0  ;;  %v608_v5 = vld [vmem:[%s822_s1 + $0x70] sm:$0xff]  ;;  %v607_v9 = vld [vmem:[%s822_s1 + $0x68] sm:$0xff] }
   0x3   :  { %v617_v2 = vld [vmem:[%s822_s1 + $0xb8] sm:$0xff]  ;;  %341 = vmatpush.bf16.msra.mxu1 %v609_v1  ;;  %v616_v6 = vld [vmem:[%s822_s1 + $0xb0] sm:$0xff]  ;;  %v615_v10 = vld [vmem:[%s822_s1 + $0xa8] sm:$0xff] }
   0x4   :  { %v625_v3 = vld [vmem:[%s822_s1 + $0xf8] sm:$0xff]  ;;  %360 = vmatpush.bf16.msra.mxu2 %v617_v2  ;;  %v624_v7 = vld [vmem:[%s822_s1 + $0xf0] sm:$0xff]  ;;  %v623_v11 = vld [vmem:[%s822_s1 + $0xe8] sm:$0xff] }
   0x5   :  { %379 = vmatpush.bf16.msra.mxu3 %v625_v3  ;;  %v598_v12 = vld [vmem:[%s822_s1 + $0x20] sm:$0xff]  ;;  %v597_v16 = vld [vmem:[%s822_s1 + $0x18] sm:$0xff]  ;;  %v596_v20 = vld [vmem:[%s822_s1 + $0x10] sm:$0xff] }
   0x6   :  { %323 = vmatpush.bf16.msra.mxu0 %v600_v4  ;;  %v606_v13 = vld [vmem:[%s822_s1 + $0x60] sm:$0xff]  ;;  %v605_v17 = vld [vmem:[%s822_s1 + $0x58] sm:$0xff]  ;;  %v604_v21 = vld [vmem:[%s822_s1 + $0x50] sm:$0xff] }
   0x7   :  { %342 = vmatpush.bf16.msra.mxu1 %v608_v5  ;;  %v614_v14 = vld [vmem:[%s822_s1 + $0xa0] sm:$0xff]  ;;  %v613_v18 = vld [vmem:[%s822_s1 + $0x98] sm:$0xff]  ;;  %v612_v22 = vld [vmem:[%s822_s1 + $0x90] sm:$0xff] }
   0x8   :  { %361 = vmatpush.bf16.msra.mxu2 %v616_v6  ;;  %v622_v15 = vld [vmem:[%s822_s1 + $0xe0] sm:$0xff]  ;;  %v621_v19 = vld [vmem:[%s822_s1 + $0xd8] sm:$0xff]  ;;  %v620_v23 = vld [vmem:[%s822_s1 + $0xd0] sm:$0xff] }
   0x9   :  { %380 = vmatpush.bf16.msra.mxu3 %v624_v7  ;;  %v595_v24 = vld [vmem:[%s822_s1 + $0x8] sm:$0xff]  ;;  %v594_v28 = vld [vmem:[%s822_s1] sm:$0xff]  ;;  %v588_v33 = vld [vmem:[%s824_s0 + $0xc] sm:$0xf0] }
   0xa   :  { %324 = vmatpush.bf16.msra.mxu0 %v599_v8  ;;  %v603_v25 = vld [vmem:[%s822_s1 + $0x48] sm:$0xff]  ;;  %v602_v29 = vld [vmem:[%s822_s1 + $0x40] sm:$0xff]  ;;  %v430_v35 = vld [vmem:[%s824_s0 + $0x10] sm:$0xf0] }
   0xb   :  { %343 = vmatpush.bf16.msra.mxu1 %v607_v9  ;;  %v611_v26 = vld [vmem:[%s822_s1 + $0x88] sm:$0xff]  ;;  %v610_v30 = vld [vmem:[%s822_s1 + $0x80] sm:$0xff]  ;;  %v589_v37 = vld [vmem:[%s824_s0 + $0x14] sm:$0xf0] }
   0xc   :  { %362 = vmatpush.bf16.msra.mxu2 %v615_v10  ;;  %v619_v27 = vld [vmem:[%s822_s1 + $0xc8] sm:$0xff]  ;;  %v618_v31 = vld [vmem:[%s822_s1 + $0xc0] sm:$0xff]  ;;  %v438_v39 = vld [vmem:[%s824_s0 + $0x18] sm:$0xf0] }
   0xd   :  { %381 = vmatpush.bf16.msra.mxu3 %v623_v11  ;;  %v428_v32 = vld [vmem:[%s824_s0] sm:$0xf]  ;;  %v586_v34 = vld [vmem:[%s824_s0 + $0x4] sm:$0xf]  ;;  %v436_v36 = vld [vmem:[%s824_s0 + $0x8] sm:$0xf] }
   0xe   :  { %325 = vmatpush.bf16.msra.mxu0 %v598_v12  ;;  %v587_v38 = vld [vmem:[%s824_s0 + $0xc] sm:$0xf]  ;;  %v429_v40 = vor.u32 %v588_v33, %v428_v32  ;;  %v433_v41 = vor.u32 %v586_v34, %v430_v35  ;;  %v437_v42 = vor.u32 %v589_v37, %v436_v36  ;;  %v444_v44 = vld [vmem:[%s824_s0 + $0x20] sm:$0xf]  ;;  %v592_v45 = vld [vmem:[%s824_s0 + $0x2c] sm:$0xf0] }
   0xf   :  { %344 = vmatpush.bf16.msra.mxu1 %v606_v13  ;;  %v441_v43 = vor.u32 %v587_v38, %v438_v39  ;;  %v590_v46 = vld [vmem:[%s824_s0 + $0x24] sm:$0xf]  ;;  %v446_v47 = vld [vmem:[%s824_s0 + $0x30] sm:$0xf0]  ;;  %v452_v48 = vld [vmem:[%s824_s0 + $0x28] sm:$0xf]  ;;  %v445_v52 = vor.u32 %v592_v45, %v444_v44 }
  0x10   :  { %363 = vmatpush.bf16.msra.mxu2 %v614_v14  ;;  %v593_v49 = vld [vmem:[%s824_s0 + $0x34] sm:$0xf0]  ;;  %v591_v50 = vld [vmem:[%s824_s0 + $0x2c] sm:$0xf]  ;;  %v454_v51 = vld [vmem:[%s824_s0 + $0x38] sm:$0xf0]  ;;  %v449_v53 = vor.u32 %v590_v46, %v446_v47 }
  0x11   :  { %382 = vmatpush.bf16.msra.mxu3 %v622_v15  ;;  %v453_v54 = vor.u32 %v593_v49, %v452_v48  ;;  %v457_v55 = vor.u32 %v591_v50, %v454_v51  ;;  %v626_v56 = vld [vmem:[%s823_s2] ss:$0 sm:$0xff] }
  0x12   :  { %326 = vmatpush.bf16.msra.mxu0 %v597_v16 }
  0x13   :  { %345 = vmatpush.bf16.msra.mxu1 %v605_v17 }
  0x14   :  { %364 = vmatpush.bf16.msra.mxu2 %v613_v18 }
  0x15   :  { %383 = vmatpush.bf16.msra.mxu3 %v621_v19 }
  0x16   :  { %327 = vmatpush.bf16.msra.mxu0 %v596_v20 }
  0x17   :  { %346 = vmatpush.bf16.msra.mxu1 %v604_v21 }
  0x18   :  { %365 = vmatpush.bf16.msra.mxu2 %v612_v22 }
  0x19   :  { %384 = vmatpush.bf16.msra.mxu3 %v620_v23 }
  0x1a   :  { %328 = vmatpush.bf16.msra.mxu0 %v595_v24 }
  0x1b   :  { %347 = vmatpush.bf16.msra.mxu1 %v603_v25 }
  0x1c   :  { %366 = vmatpush.bf16.msra.mxu2 %v611_v26 }
  0x1d   :  { %385 = vmatpush.bf16.msra.mxu3 %v619_v27 }
  0x1e   :  { %329 = vmatpush.bf16.msra.mxu0 %v594_v28 }
  0x1f   :  { %348 = vmatpush.bf16.msra.mxu1 %v602_v29 }
  0x20   :  { %367 = vmatpush.bf16.msra.mxu2 %v610_v30 }
  0x21   :  { %386 = vmatpush.bf16.msra.mxu3 %v618_v31  ;;  %330 = vmatmul.bf16.vlgmr.msra.gmra.mxu0 %v429_v40 }
  0x22   :  { %349 = vmatmul.bf16.vlgmr.msra.gmra.mxu1 %v433_v41 }
  0x23   :  { %368 = vmatmul.bf16.vlgmr.msra.gmra.mxu2 %v437_v42 }
  0x24   :  { %387 = vmatmul.bf16.vlgmr.msra.gmra.mxu3 %v441_v43 }
  0x31   :  { %335 = vmatmul.bf16.gmra.mxu0 %v445_v52 }
  0x32   :  { %354 = vmatmul.bf16.gmra.mxu1 %v449_v53 }
  0x33   :  { %373 = vmatmul.bf16.gmra.mxu2 %v453_v54 }
  0x34   :  { %392 = vmatmul.bf16.gmra.mxu3 %v457_v55 }
  0x9e   :  { %v331_v57 = vpop.f32.mrf.mxu0 }
  0x9f   :  { %v350_v58 = vpop.f32.mrf.mxu1  ;;  %v332_v59 = vadd.f32 %v626_v56, %v331_v57 }
  0xa1   :  { %v351_v60 = vadd.f32 %v350_v58, %v332_v59 }
  0xa6   :  { %v369_v61 = vpop.f32.mrf.mxu2  ;;  %v333_v0 = vpop.f32.mrf.mxu0 }
  0xa7   :  { %v388_v62 = vpop.f32.mrf.mxu3  ;;  %v370_v63 = vadd.f32 %v369_v61, %v351_v60  ;;  %v352_v1 = vpop.f32.mrf.mxu1  ;;  %v334_v3 = vadd.f32 %v626_v56, %v333_v0 }
  0xa9   :  { %v389_v2 = vadd.f32 %v388_v62, %v370_v63  ;;  %v353_v6 = vadd.f32 %v352_v1, %v334_v3 }
  0xab   :  { %v398_v4 = vsub.f32 0.0, %v389_v2 }
  0xad   :  { %v402_v5 = vmul.f32 1.442695, %v398_v4 }
  0xae   :  { %v371_v7 = vpop.f32.mrf.mxu2  ;;  %v336_v10 = vpop.f32.mrf.mxu0 }
  0xaf   :  { %v390_v8 = vpop.f32.mrf.mxu3  ;;  %627 = vpow2.f32 %v402_v5  ;;  %v372_v9 = vadd.f32 %v371_v7, %v353_v6  ;;  %v337_v11 = vadd.f32 %v626_v56, %v336_v10  ;;  %v355_v13 = vpop.f32.mrf.mxu1 }
  0xb1   :  { %v391_v12 = vadd.f32 %v390_v8, %v372_v9  ;;  %v356_v15 = vadd.f32 %v355_v13, %v337_v11 }
  0xb3   :  { %v399_v14 = vsub.f32 0.0, %v391_v12 }
  0xb5   :  { %v628_v16 = vpop.eup %627  ;;  %v404_v17 = vmul.f32 1.442695, %v399_v14 }
  0xb6   :  { %v410_v18 = vadd.f32 1.0, %v628_v16  ;;  %v374_v19 = vpop.f32.mrf.mxu2  ;;  %v338_v22 = vpop.f32.mrf.mxu0 }
  0xb7   :  { %v393_v20 = vpop.f32.mrf.mxu3  ;;  %629 = vpow2.f32 %v404_v17  ;;  %v375_v21 = vadd.f32 %v374_v19, %v356_v15  ;;  %v339_v24 = vadd.f32 %v626_v56, %v338_v22  ;;  %v357_v26 = vpop.f32.mrf.mxu1 }
  0xb8   :  { %631 = vrcp.f32 %v410_v18 }
  0xb9   :  { %v394_v23 = vadd.f32 %v393_v20, %v375_v21  ;;  %v358_v29 = vadd.f32 %v357_v26, %v339_v24 }
  0xbb   :  { %v400_v25 = vsub.f32 0.0, %v394_v23 }
  0xbd   :  { %v630_v27 = vpop.eup %629  ;;  %v406_v28 = vmul.f32 1.442695, %v400_v25 }
  0xbe   :  { %v632_v30 = vpop.eup %631  ;;  %v411_v31 = vadd.f32 1.0, %v630_v27  ;;  %v376_v32 = vpop.f32.mrf.mxu2 }
  0xbf   :  { %418 = vst [vmem:[%s825_s3] sm:$0xff] %v632_v30  ;;  %633 = vpow2.f32 %v406_v28  ;;  %v377_v33 = vadd.f32 %v376_v32, %v358_v29  ;;  %v395_v34 = vpop.f32.mrf.mxu3 }
  0xc0   :  { %635 = vrcp.f32 %v411_v31 }
  0xc1   :  { %v396_v35 = vadd.f32 %v395_v34, %v377_v33 }
  0xc3   :  { %v401_v36 = vsub.f32 0.0, %v396_v35 }
  0xc5   :  { %v634_v37 = vpop.eup %633  ;;  %v408_v38 = vmul.f32 1.442695, %v401_v36 }
  0xc6   :  { %v636_v39 = vpop.eup %635  ;;  %v412_v40 = vadd.f32 1.0, %v634_v37 }
  0xc7   :  { %419 = vst [vmem:[%s825_s3 + $0x8] sm:$0xff] %v636_v39  ;;  %637 = vpow2.f32 %v408_v38 }
  0xc8   :  { %639 = vrcp.f32 %v412_v40 }
  0xcd   :  { %v638_v41 = vpop.eup %637 }
  0xce   :  { %v640_v42 = vpop.eup %639  ;;  %v413_v43 = vadd.f32 1.0, %v638_v41 }
  0xcf   :  { %420 = vst [vmem:[%s825_s3 + $0x10] sm:$0xff] %v640_v42 }
  0xd0   :  { %641 = vrcp.f32 %v413_v43 }
  0xd6   :  { %v642_v44 = vpop.eup %641 }
  0xd7   :  { %421 = vst [vmem:[%s825_s3 + $0x18] sm:$0xff] %v642_v44 }

</bundles_post_ra>
